<compile_context>
chip_gen: v5e
topology: v5e:2x2
jax: 0.10.0
libtpu: 0.0.40
codegen_flags: <defaults>
</compile_context>

<pallas_src>
import math
import functools

import jax
import jax.numpy as jnp
import numpy as np
from jax import lax
from jax.experimental import pallas as pl
from jax.experimental.pallas import tpu as pltpu


# ---------------------------------------------------------------------------
# Fused kernel: projections + per-head attention + output linear.
# One (batch element, q tile) per grid step.
# ---------------------------------------------------------------------------
def _fused_mha_kernel(q_ref, k_ref, v_ref, wq_ref, wk_ref, wv_ref, wo_ref,
                      b_ref, o_ref, kh_scr, vh_scr, cat_scr, *, h, d_k, d_v):
    # q_ref           : (1, tq,  d_model) f32   — one q tile of one batch element
    # k_ref / v_ref   : (1, seq, d_model) f32   — full sequence (block constant over qi)
    # wq_ref / wk_ref : (d_model, h*d_k)  bf16  — head-fused projections (scale in wq)
    # wv_ref          : (d_model, h*d_v)  bf16
    # wo_ref          : (h*d_v, d_model)  bf16  — W_lin.T
    # b_ref           : (1, d_model)      f32
    # o_ref           : (1, tq, d_model)  f32   — lane-dense output tile
    # kh_scr          : (seq, h*d_k) bf16 VMEM  — projected K (persists across qi)
    # vh_scr          : (seq, h*d_v) bf16 VMEM  — projected V (persists across qi)
    # cat_scr         : (tq,  h*d_v) bf16 VMEM  — concat-of-heads staging
    qi = pl.program_id(1)

    # Project K/V once per batch element; reused across all q tiles (the
    # q-tile grid axis is "arbitrary", i.e. iterated sequentially per core).
    @pl.when(qi == 0)
    def _():
        k_bf = k_ref[0].astype(jnp.bfloat16)
        v_bf = v_ref[0].astype(jnp.bfloat16)
        kh_scr[...] = jnp.dot(k_bf, wk_ref[...],
                              preferred_element_type=jnp.float32).astype(jnp.bfloat16)
        vh_scr[...] = jnp.dot(v_bf, wv_ref[...],
                              preferred_element_type=jnp.float32).astype(jnp.bfloat16)

    # Q projection for this tile: one wide MXU matmul (1/sqrt(d_k) pre-folded).
    q_bf = q_ref[0].astype(jnp.bfloat16)
    qh_all = jnp.dot(q_bf, wq_ref[...],
                     preferred_element_type=jnp.float32).astype(jnp.bfloat16)

    kh_all = kh_scr[...]        # (seq, h*d_k) bf16
    vh_all = vh_scr[...]        # (seq, h*d_v) bf16

    # Per-head attention.  Static Python loop (static lane offsets for the
    # per-head slices); nothing is carried across iterations — each head's
    # output goes straight into the VMEM concat scratch.
    for hh in range(h):
        qh = qh_all[:, hh * d_k:(hh + 1) * d_k]             # (tq,  d_k) bf16
        kh = kh_all[:, hh * d_k:(hh + 1) * d_k]             # (seq, d_k) bf16
        vh = vh_all[:, hh * d_v:(hh + 1) * d_v]             # (seq, d_v) bf16

        # Q @ K^T via dot_general contracting last dims (no explicit .T).
        scores = lax.dot_general(qh, kh, (((1,), (1,)), ((), ())),
                                 preferred_element_type=jnp.float32)    # (tq, seq)

        m = jnp.max(scores, axis=-1, keepdims=True)
        p = jnp.exp(scores - m)                              # f32, unnormalized
        denom = jnp.sum(p, axis=-1, keepdims=True)           # f32

        # Deferred normalization: scale the (tq, d_v) head output instead of
        # the (tq, seq) probability matrix.
        o_h = jnp.dot(p.astype(jnp.bfloat16), vh,
                      preferred_element_type=jnp.float32)    # (tq, d_v) f32
        r = pl.reciprocal(denom, approx=True)                # EUP vrcp (free slot)
        r = r * (2.0 - denom * r)                            # 1 Newton step -> ~f32
        cat_scr[:, hh * d_v:(hh + 1) * d_v] = (o_h * r).astype(jnp.bfloat16)

    # Single wide output projection (K = h*d_v fills the MXU) + bias; one
    # lane-dense f32 store.
    out = jnp.dot(cat_scr[...], wo_ref[...], preferred_element_type=jnp.float32)
    o_ref[0] = out + b_ref[...]


# ---------------------------------------------------------------------------
# One-off parameter layout / dtype transform (hoisted off the per-call path).
# ---------------------------------------------------------------------------
def prepare_params(W_q, W_k, W_v, W_lin, b_lin):
    # * per-head projections fused into wide (d_model, h*d_k/v) matrices
    # * 1/sqrt(d_k) attention scale folded into the fused W_q
    # * MXU operands pre-cast to bf16 (f32 accumulation happens in-kernel)
    # * W_lin pre-transposed; bias kept f32 (added after f32 accumulation)
    h, d_model, d_k = W_q.shape
    d_v = W_v.shape[-1]
    scale = 1.0 / math.sqrt(d_k)
    wq_f = (jnp.transpose(W_q, (1, 0, 2)).reshape(d_model, h * d_k) * scale
            ).astype(jnp.bfloat16)
    wk_f = jnp.transpose(W_k, (1, 0, 2)).reshape(d_model, h * d_k).astype(jnp.bfloat16)
    wv_f = jnp.transpose(W_v, (1, 0, 2)).reshape(d_model, h * d_v).astype(jnp.bfloat16)
    wo_t = W_lin.T.astype(jnp.bfloat16)                      # (h*d_v, d_model)
    b2d = b_lin.reshape(1, d_model).astype(jnp.float32)
    return wq_f, wk_f, wv_f, wo_t, b2d


def _pick_q_tile(seq):
    # TODO(synk): derive per-generation tile budgets (v7x: 64 MiB/TC VMEM).
    if seq <= 512:
        return seq
    for t in (512, 256, 128):
        if seq % t == 0:
            return t
    return seq


# ---------------------------------------------------------------------------
# pallas_call wrapper
# ---------------------------------------------------------------------------
def _mha_pallas(q, k, v, wq_f, wk_f, wv_f, wo_t, b2d, *, h, single_buffer_weights):
    batch, seq, d_model = q.shape
    hdk = wq_f.shape[1]
    hdv = wv_f.shape[1]
    d_k = hdk // h
    d_v = hdv // h
    tq = _pick_q_tile(seq)
    n_q_tiles = seq // tq

    if single_buffer_weights:
        # Constant block index across the whole grid -> one buffer is enough.
        def w_spec(shape):
            return pl.BlockSpec(shape, lambda b, qi: (0,) * len(shape),
                                pipeline_mode=pl.Buffered(1))
    else:
        def w_spec(shape):
            return pl.BlockSpec(shape, lambda b, qi: (0,) * len(shape))

    # Advisory cost hint for XLA's scheduler.
    flops = (
        2 * batch * seq * d_model * (hdk + hdv)       # K/V projections (once / batch elt)
        + 2 * batch * seq * d_model * hdk             # Q projection (all tiles)
        + 2 * batch * seq * seq * (hdk + hdv)         # QK^T + PV over all heads
        + 2 * batch * seq * hdv * d_model             # fused output linear
    )
    transcendentals = batch * h * seq * seq           # exp
    bytes_accessed = (
        4 * 4 * batch * seq * d_model                              # q,k,v in + out (f32)
        + 2 * (d_model * (2 * hdk + hdv) + hdv * d_model)          # bf16 weights
        + 4 * d_model                                              # bias
    )

    kernel = functools.partial(_fused_mha_kernel, h=h, d_k=d_k, d_v=d_v)

    return pl.pallas_call(
        kernel,
        out_shape=jax.ShapeDtypeStruct((batch, seq, d_model), jnp.float32),
        grid_spec=pltpu.PrefetchScalarGridSpec(
            num_scalar_prefetch=0,
            grid=(batch, n_q_tiles),
            in_specs=[
                pl.BlockSpec((1, tq, d_model), lambda b, qi: (b, qi, 0)),   # q tile
                pl.BlockSpec((1, seq, d_model), lambda b, qi: (b, 0, 0)),   # k (full seq)
                pl.BlockSpec((1, seq, d_model), lambda b, qi: (b, 0, 0)),   # v (full seq)
                w_spec((d_model, hdk)),                                     # Wq fused (bf16)
                w_spec((d_model, hdk)),                                     # Wk fused (bf16)
                w_spec((d_model, hdv)),                                     # Wv fused (bf16)
                w_spec((hdv, d_model)),                                     # W_lin.T (bf16)
                w_spec((1, d_model)),                                       # bias (f32)
            ],
            out_specs=pl.BlockSpec((1, tq, d_model), lambda b, qi: (b, qi, 0)),
            scratch_shapes=[
                pltpu.VMEM((seq, hdk), jnp.bfloat16),   # projected K (persists over qi)
                pltpu.VMEM((seq, hdv), jnp.bfloat16),   # projected V (persists over qi)
                pltpu.VMEM((tq, hdv), jnp.bfloat16),    # concat-of-heads staging
            ],
        ),
        compiler_params=pltpu.CompilerParams(
            dimension_semantics=("parallel", "arbitrary"),
            vmem_limit_bytes=48 * 1024 * 1024,
        ),
        cost_estimate=pl.CostEstimate(
            flops=int(flops),
            transcendentals=int(transcendentals),
            bytes_accessed=int(bytes_accessed),
        ),
    )(q, k, v, wq_f, wk_f, wv_f, wo_t, b2d)


def multi_head_attention(q, k, v, wq_f, wk_f, wv_f, wo_t, b2d, *, h):
    """MultiHeadAttention.forward (mask_3d=None path)."""
    # Prefer single-buffered weight blocks (their block index never changes);
    # fall back to default double buffering if pl.Buffered(1) is unsupported
    # by the installed JAX/libtpu.
    try:
        out = _mha_pallas(q, k, v, wq_f, wk_f, wv_f, wo_t, b2d, h=h,
                          single_buffer_weights=True)
        return jax.block_until_ready(out)
    except Exception:
        return _mha_pallas(q, k, v, wq_f, wk_f, wv_f, wo_t, b2d, h=h,
                           single_buffer_weights=False)


# ---------------------------------------------------------------------------
# Pure-JAX reference (mirrors the PyTorch forward exactly, in f32)
# ---------------------------------------------------------------------------
def reference_mha(q, k, v, W_q, W_k, W_v, W_lin, b_lin):
    batch, seq, d_model = q.shape
    h, _, d_k = W_q.shape
    d_v = W_v.shape[-1]
    qh = jnp.einsum("bsd,hdk->hbsk", q, W_q)
    kh = jnp.einsum("bsd,hdk->hbsk", k, W_k)
    vh = jnp.einsum("bsd,hdk->hbsk", v, W_v)
    scores = jnp.einsum("hbqk,hbsk->hbqs", qh, kh) / math.sqrt(d_k)
    p = jax.nn.softmax(scores, axis=-1)
    o = jnp.einsum("hbqs,hbsv->hbqv", p, vh)               # (h, b, s, d_v)
    concat = jnp.transpose(o, (1, 2, 0, 3)).reshape(batch, seq, h * d_v)
    return concat @ W_lin.T + b_lin


if __name__ == "__main__":
    # Small shapes consistent with the module.
    batch, seq, d_model, h = 2, 8, 32, 4
    d_k = d_model // h
    d_v = d_model // h

    key = jax.random.PRNGKey(0)
    kq, kk, kv, kwq, kwk, kwv, kwl, kbl = jax.random.split(key, 8)

    q = jax.random.normal(kq, (batch, seq, d_model), jnp.float32)
    k = jax.random.normal(kk, (batch, seq, d_model), jnp.float32)
    v = jax.random.normal(kv, (batch, seq, d_model), jnp.float32)

    # Deterministic synthetic parameters (module's __init__ gives the shapes).
    W_q = 0.1 * jax.random.normal(kwq, (h, d_model, d_k), jnp.float32)
    W_k = 0.1 * jax.random.normal(kwk, (h, d_model, d_k), jnp.float32)
    W_v = 0.1 * jax.random.normal(kwv, (h, d_model, d_v), jnp.float32)
    W_lin = 0.1 * jax.random.normal(kwl, (d_model, h * d_v), jnp.float32)
    b_lin = 0.1 * jax.random.normal(kbl, (d_model,), jnp.float32)

    # One-off parameter layout / dtype prep (hoisted out of the per-call path).
    params = jax.block_until_ready(prepare_params(W_q, W_k, W_v, W_lin, b_lin))

    out = multi_head_attention(q, k, v, *params, h=h)
    out = jax.block_until_ready(out)

    ref = reference_mha(q, k, v, W_q, W_k, W_v, W_lin, b_lin)
    # bf16 MXU operands (f32 accumulation) -> relaxed tolerance vs. f32 reference.
    np.testing.assert_allclose(np.asarray(out), np.asarray(ref),
                               rtol=2e-2, atol=2e-2)

    print("KERNEL_OK")
</pallas_src>

<mosaic_0001>
module attributes {stable_mosaic.version = 11 : i64} {
  func.func @_fused_mha_kernel(%arg0: i32, %arg1: i32, %arg2: memref<1x8x32xf32, #tpu.memory_space<vmem>>, %arg3: memref<1x8x32xf32, #tpu.memory_space<vmem>>, %arg4: memref<1x8x32xf32, #tpu.memory_space<vmem>>, %arg5: memref<32x32xbf16, #tpu.memory_space<vmem>>, %arg6: memref<32x32xbf16, #tpu.memory_space<vmem>>, %arg7: memref<32x32xbf16, #tpu.memory_space<vmem>>, %arg8: memref<32x32xbf16, #tpu.memory_space<vmem>>, %arg9: memref<1x32xf32, #tpu.memory_space<vmem>>, %arg10: memref<1x8x32xf32, #tpu.memory_space<vmem>>, %arg11: memref<8x32xbf16, #tpu.memory_space<vmem>>, %arg12: memref<8x32xbf16, #tpu.memory_space<vmem>>, %arg13: memref<8x32xbf16, #tpu.memory_space<vmem>>) attributes {dimension_semantics = [#tpu.dimension_semantics<parallel>, #tpu.dimension_semantics<arbitrary>], iteration_bounds = array<i64: 2, 1>, scalar_prefetch = 0 : i64, scratch_operands = 3 : i64, tpu.core_type = #tpu.core_type<tc>, window_params = [{transform_indices = @transform_0, window_bounds = array<i64: 1, 8, 32>}, {transform_indices = @transform_1, window_bounds = array<i64: 1, 8, 32>}, {transform_indices = @transform_2, window_bounds = array<i64: 1, 8, 32>}, {pipeline_mode = #tpu.pipeline_mode<synchronous>, transform_indices = @transform_3, window_bounds = array<i64: 32, 32>}, {pipeline_mode = #tpu.pipeline_mode<synchronous>, transform_indices = @transform_4, window_bounds = array<i64: 32, 32>}, {pipeline_mode = #tpu.pipeline_mode<synchronous>, transform_indices = @transform_5, window_bounds = array<i64: 32, 32>}, {pipeline_mode = #tpu.pipeline_mode<synchronous>, transform_indices = @transform_6, window_bounds = array<i64: 32, 32>}, {pipeline_mode = #tpu.pipeline_mode<synchronous>, transform_indices = @transform_7, window_bounds = array<i64: 1, 32>}, {transform_indices = @transform_8, window_bounds = array<i64: 1, 8, 32>}]} {
    %c0_i32 = arith.constant 0 : i32
    %0 = arith.cmpi eq, %arg1, %c0_i32 : i32
    %1 = arith.extui %0 : i1 to i32
    %c0_i32_0 = arith.constant 0 : i32
    %2 = arith.cmpi ne, %1, %c0_i32_0 : i32
    scf.if %2 {
      %c0_44 = arith.constant 0 : index
      %c0_45 = arith.constant 0 : index
      %c0_46 = arith.constant 0 : index
      %108 = vector.load %arg3[%c0_44, %c0_45, %c0_46] : memref<1x8x32xf32, #tpu.memory_space<vmem>>, vector<1x8x32xf32>
      %109 = vector.shape_cast %108 : vector<1x8x32xf32> to vector<8x32xf32>
      %110 = arith.truncf %109 : vector<8x32xf32> to vector<8x32xbf16>
      %c0_47 = arith.constant 0 : index
      %c0_48 = arith.constant 0 : index
      %c0_49 = arith.constant 0 : index
      %111 = vector.load %arg4[%c0_47, %c0_48, %c0_49] : memref<1x8x32xf32, #tpu.memory_space<vmem>>, vector<1x8x32xf32>
      %112 = vector.shape_cast %111 : vector<1x8x32xf32> to vector<8x32xf32>
      %113 = arith.truncf %112 : vector<8x32xf32> to vector<8x32xbf16>
      %c0_50 = arith.constant 0 : index
      %c0_51 = arith.constant 0 : index
      %114 = vector.load %arg6[%c0_50, %c0_51] : memref<32x32xbf16, #tpu.memory_space<vmem>>, vector<32x32xbf16>
      %cst_52 = arith.constant dense<0.000000e+00> : vector<8x32xf32>
      %115 = tpu.matmul %110, %114, %cst_52 {dimension_numbers = #tpu.dot_dimension_numbers<[1], [0], [0], [1], [0, 0, 1, 1], [], []>} : vector<8x32xbf16>, vector<32x32xbf16>, vector<8x32xf32> -> vector<8x32xf32>
      %116 = arith.truncf %115 : vector<8x32xf32> to vector<8x32xbf16>
      %c0_53 = arith.constant 0 : index
      %c0_54 = arith.constant 0 : index
      %117 = vector.load %arg11[%c0_53, %c0_54] : memref<8x32xbf16, #tpu.memory_space<vmem>>, vector<8x32xbf16>
      tpu.vector_store %arg11[%c0_53, %c0_54], %116 {strides = array<i32>} : memref<8x32xbf16, #tpu.memory_space<vmem>>, vector<8x32xbf16>,
      %c0_55 = arith.constant 0 : index
      %c0_56 = arith.constant 0 : index
      %118 = vector.load %arg7[%c0_55, %c0_56] : memref<32x32xbf16, #tpu.memory_space<vmem>>, vector<32x32xbf16>
      %cst_57 = arith.constant dense<0.000000e+00> : vector<8x32xf32>
      %119 = tpu.matmul %113, %118, %cst_57 {dimension_numbers = #tpu.dot_dimension_numbers<[1], [0], [0], [1], [0, 0, 1, 1], [], []>} : vector<8x32xbf16>, vector<32x32xbf16>, vector<8x32xf32> -> vector<8x32xf32>
      %120 = arith.truncf %119 : vector<8x32xf32> to vector<8x32xbf16>
      %c0_58 = arith.constant 0 : index
      %c0_59 = arith.constant 0 : index
      %121 = vector.load %arg12[%c0_58, %c0_59] : memref<8x32xbf16, #tpu.memory_space<vmem>>, vector<8x32xbf16>
      tpu.vector_store %arg12[%c0_58, %c0_59], %120 {strides = array<i32>} : memref<8x32xbf16, #tpu.memory_space<vmem>>, vector<8x32xbf16>,
    } else {
    }
    %c0 = arith.constant 0 : index
    %c0_1 = arith.constant 0 : index
    %c0_2 = arith.constant 0 : index
    %3 = vector.load %arg2[%c0, %c0_1, %c0_2] : memref<1x8x32xf32, #tpu.memory_space<vmem>>, vector<1x8x32xf32>
    %4 = vector.shape_cast %3 : vector<1x8x32xf32> to vector<8x32xf32>
    %5 = arith.truncf %4 : vector<8x32xf32> to vector<8x32xbf16>
    %c0_3 = arith.constant 0 : index
    %c0_4 = arith.constant 0 : index
    %6 = vector.load %arg5[%c0_3, %c0_4] : memref<32x32xbf16, #tpu.memory_space<vmem>>, vector<32x32xbf16>
    %cst = arith.constant dense<0.000000e+00> : vector<8x32xf32>
    %7 = tpu.matmul %5, %6, %cst {dimension_numbers = #tpu.dot_dimension_numbers<[1], [0], [0], [1], [0, 0, 1, 1], [], []>} : vector<8x32xbf16>, vector<32x32xbf16>, vector<8x32xf32> -> vector<8x32xf32>
    %8 = arith.truncf %7 : vector<8x32xf32> to vector<8x32xbf16>
    %c0_5 = arith.constant 0 : index
    %c0_6 = arith.constant 0 : index
    %9 = vector.load %arg11[%c0_5, %c0_6] : memref<8x32xbf16, #tpu.memory_space<vmem>>, vector<8x32xbf16>
    %c0_7 = arith.constant 0 : index
    %c0_8 = arith.constant 0 : index
    %10 = vector.load %arg12[%c0_7, %c0_8] : memref<8x32xbf16, #tpu.memory_space<vmem>>, vector<8x32xbf16>
    %11 = vector.extract_strided_slice %8 {offsets = [0, 0], sizes = [8, 8], strides = [1, 1]} : vector<8x32xbf16> to vector<8x8xbf16>
    %12 = vector.extract_strided_slice %9 {offsets = [0, 0], sizes = [8, 8], strides = [1, 1]} : vector<8x32xbf16> to vector<8x8xbf16>
    %13 = vector.extract_strided_slice %10 {offsets = [0, 0], sizes = [8, 8], strides = [1, 1]} : vector<8x32xbf16> to vector<8x8xbf16>
    %cst_9 = arith.constant dense<0.000000e+00> : vector<8x8xf32>
    %14 = tpu.matmul %11, %12, %cst_9 {dimension_numbers = #tpu.dot_dimension_numbers<[1], [1], [0], [0], [0, 0, 1, 0], [], []>} : vector<8x8xbf16>, vector<8x8xbf16>, vector<8x8xf32> -> vector<8x8xf32>
    %cst_10 = arith.constant dense<0xFF800000> : vector<8xf32>
    %15 = vector.multi_reduction <maximumf>, %14, %cst_10 [1] : vector<8x8xf32> to vector<8xf32>
    %16 = vector.shape_cast %15 : vector<8xf32> to vector<8x1xf32>
    %17 = vector.broadcast %16 : vector<8x1xf32> to vector<8x8xf32>
    %18 = arith.subf %14, %17 : vector<8x8xf32>
    %19 = math.exp %18 : vector<8x8xf32>
    %cst_11 = arith.constant dense<0.000000e+00> : vector<8xf32>
    %20 = vector.multi_reduction <add>, %19, %cst_11 [1] : vector<8x8xf32> to vector<8xf32>
    %21 = vector.shape_cast %20 : vector<8xf32> to vector<8x1xf32>
    %22 = arith.truncf %19 : vector<8x8xf32> to vector<8x8xbf16>
    %cst_12 = arith.constant dense<0.000000e+00> : vector<8x8xf32>
    %23 = tpu.matmul %22, %13, %cst_12 {dimension_numbers = #tpu.dot_dimension_numbers<[1], [0], [0], [1], [0, 0, 1, 1], [], []>} : vector<8x8xbf16>, vector<8x8xbf16>, vector<8x8xf32> -> vector<8x8xf32>
    %24 = tpu.reciprocal %21 {approx = true} : vector<8x1xf32> -> vector<8x1xf32>
    %25 = arith.mulf %21, %24 : vector<8x1xf32>
    %cst_13 = arith.constant 2.000000e+00 : f32
    %26 = vector.broadcast %cst_13 : f32 to vector<8x1xf32>
    %27 = arith.subf %26, %25 : vector<8x1xf32>
    %28 = arith.mulf %24, %27 : vector<8x1xf32>
    %29 = vector.broadcast %28 : vector<8x1xf32> to vector<8x8xf32>
    %30 = arith.mulf %23, %29 : vector<8x8xf32>
    %31 = arith.truncf %30 : vector<8x8xf32> to vector<8x8xbf16>
    %c0_14 = arith.constant 0 : index
    %c0_15 = arith.constant 0 : index
    %32 = vector.load %arg13[%c0_14, %c0_15] : memref<8x32xbf16, #tpu.memory_space<vmem>>, vector<8x8xbf16>
    tpu.vector_store %arg13[%c0_14, %c0_15], %31 {strides = array<i32>} : memref<8x32xbf16, #tpu.memory_space<vmem>>, vector<8x8xbf16>,
    %33 = vector.extract_strided_slice %8 {offsets = [0, 8], sizes = [8, 8], strides = [1, 1]} : vector<8x32xbf16> to vector<8x8xbf16>
    %34 = vector.extract_strided_slice %9 {offsets = [0, 8], sizes = [8, 8], strides = [1, 1]} : vector<8x32xbf16> to vector<8x8xbf16>
    %35 = vector.extract_strided_slice %10 {offsets = [0, 8], sizes = [8, 8], strides = [1, 1]} : vector<8x32xbf16> to vector<8x8xbf16>
    %cst_16 = arith.constant dense<0.000000e+00> : vector<8x8xf32>
    %36 = tpu.matmul %33, %34, %cst_16 {dimension_numbers = #tpu.dot_dimension_numbers<[1], [1], [0], [0], [0, 0, 1, 0], [], []>} : vector<8x8xbf16>, vector<8x8xbf16>, vector<8x8xf32> -> vector<8x8xf32>
    %cst_17 = arith.constant dense<0xFF800000> : vector<8xf32>
    %37 = vector.multi_reduction <maximumf>, %36, %cst_17 [1] : vector<8x8xf32> to vector<8xf32>
    %38 = vector.shape_cast %37 : vector<8xf32> to vector<8x1xf32>
    %39 = vector.broadcast %38 : vector<8x1xf32> to vector<8x8xf32>
    %40 = arith.subf %36, %39 : vector<8x8xf32>
    %41 = math.exp %40 : vector<8x8xf32>
    %cst_18 = arith.constant dense<0.000000e+00> : vector<8xf32>
    %42 = vector.multi_reduction <add>, %41, %cst_18 [1] : vector<8x8xf32> to vector<8xf32>
    %43 = vector.shape_cast %42 : vector<8xf32> to vector<8x1xf32>
    %44 = arith.truncf %41 : vector<8x8xf32> to vector<8x8xbf16>
    %cst_19 = arith.constant dense<0.000000e+00> : vector<8x8xf32>
    %45 = tpu.matmul %44, %35, %cst_19 {dimension_numbers = #tpu.dot_dimension_numbers<[1], [0], [0], [1], [0, 0, 1, 1], [], []>} : vector<8x8xbf16>, vector<8x8xbf16>, vector<8x8xf32> -> vector<8x8xf32>
    %46 = tpu.reciprocal %43 {approx = true} : vector<8x1xf32> -> vector<8x1xf32>
    %47 = arith.mulf %43, %46 : vector<8x1xf32>
    %cst_20 = arith.constant 2.000000e+00 : f32
    %48 = vector.broadcast %cst_20 : f32 to vector<8x1xf32>
    %49 = arith.subf %48, %47 : vector<8x1xf32>
    %50 = arith.mulf %46, %49 : vector<8x1xf32>
    %51 = vector.broadcast %50 : vector<8x1xf32> to vector<8x8xf32>
    %52 = arith.mulf %45, %51 : vector<8x8xf32>
    %53 = arith.truncf %52 : vector<8x8xf32> to vector<8x8xbf16>
    %c0_21 = arith.constant 0 : index
    %c8 = arith.constant 8 : index
    %54 = vector.load %arg13[%c0_21, %c8] : memref<8x32xbf16, #tpu.memory_space<vmem>>, vector<8x8xbf16>
    tpu.vector_store %arg13[%c0_21, %c8], %53 {strides = array<i32>} : memref<8x32xbf16, #tpu.memory_space<vmem>>, vector<8x8xbf16>,
    %55 = vector.extract_strided_slice %8 {offsets = [0, 16], sizes = [8, 8], strides = [1, 1]} : vector<8x32xbf16> to vector<8x8xbf16>
    %56 = vector.extract_strided_slice %9 {offsets = [0, 16], sizes = [8, 8], strides = [1, 1]} : vector<8x32xbf16> to vector<8x8xbf16>
    %57 = vector.extract_strided_slice %10 {offsets = [0, 16], sizes = [8, 8], strides = [1, 1]} : vector<8x32xbf16> to vector<8x8xbf16>
    %cst_22 = arith.constant dense<0.000000e+00> : vector<8x8xf32>
    %58 = tpu.matmul %55, %56, %cst_22 {dimension_numbers = #tpu.dot_dimension_numbers<[1], [1], [0], [0], [0, 0, 1, 0], [], []>} : vector<8x8xbf16>, vector<8x8xbf16>, vector<8x8xf32> -> vector<8x8xf32>
    %cst_23 = arith.constant dense<0xFF800000> : vector<8xf32>
    %59 = vector.multi_reduction <maximumf>, %58, %cst_23 [1] : vector<8x8xf32> to vector<8xf32>
    %60 = vector.shape_cast %59 : vector<8xf32> to vector<8x1xf32>
    %61 = vector.broadcast %60 : vector<8x1xf32> to vector<8x8xf32>
    %62 = arith.subf %58, %61 : vector<8x8xf32>
    %63 = math.exp %62 : vector<8x8xf32>
    %cst_24 = arith.constant dense<0.000000e+00> : vector<8xf32>
    %64 = vector.multi_reduction <add>, %63, %cst_24 [1] : vector<8x8xf32> to vector<8xf32>
    %65 = vector.shape_cast %64 : vector<8xf32> to vector<8x1xf32>
    %66 = arith.truncf %63 : vector<8x8xf32> to vector<8x8xbf16>
    %cst_25 = arith.constant dense<0.000000e+00> : vector<8x8xf32>
    %67 = tpu.matmul %66, %57, %cst_25 {dimension_numbers = #tpu.dot_dimension_numbers<[1], [0], [0], [1], [0, 0, 1, 1], [], []>} : vector<8x8xbf16>, vector<8x8xbf16>, vector<8x8xf32> -> vector<8x8xf32>
    %68 = tpu.reciprocal %65 {approx = true} : vector<8x1xf32> -> vector<8x1xf32>
    %69 = arith.mulf %65, %68 : vector<8x1xf32>
    %cst_26 = arith.constant 2.000000e+00 : f32
    %70 = vector.broadcast %cst_26 : f32 to vector<8x1xf32>
    %71 = arith.subf %70, %69 : vector<8x1xf32>
    %72 = arith.mulf %68, %71 : vector<8x1xf32>
    %73 = vector.broadcast %72 : vector<8x1xf32> to vector<8x8xf32>
    %74 = arith.mulf %67, %73 : vector<8x8xf32>
    %75 = arith.truncf %74 : vector<8x8xf32> to vector<8x8xbf16>
    %c0_27 = arith.constant 0 : index
    %c16 = arith.constant 16 : index
    %76 = vector.load %arg13[%c0_27, %c16] : memref<8x32xbf16, #tpu.memory_space<vmem>>, vector<8x8xbf16>
    tpu.vector_store %arg13[%c0_27, %c16], %75 {strides = array<i32>} : memref<8x32xbf16, #tpu.memory_space<vmem>>, vector<8x8xbf16>,
    %77 = vector.extract_strided_slice %8 {offsets = [0, 24], sizes = [8, 8], strides = [1, 1]} : vector<8x32xbf16> to vector<8x8xbf16>
    %78 = vector.extract_strided_slice %9 {offsets = [0, 24], sizes = [8, 8], strides = [1, 1]} : vector<8x32xbf16> to vector<8x8xbf16>
    %79 = vector.extract_strided_slice %10 {offsets = [0, 24], sizes = [8, 8], strides = [1, 1]} : vector<8x32xbf16> to vector<8x8xbf16>
    %cst_28 = arith.constant dense<0.000000e+00> : vector<8x8xf32>
    %80 = tpu.matmul %77, %78, %cst_28 {dimension_numbers = #tpu.dot_dimension_numbers<[1], [1], [0], [0], [0, 0, 1, 0], [], []>} : vector<8x8xbf16>, vector<8x8xbf16>, vector<8x8xf32> -> vector<8x8xf32>
    %cst_29 = arith.constant dense<0xFF800000> : vector<8xf32>
    %81 = vector.multi_reduction <maximumf>, %80, %cst_29 [1] : vector<8x8xf32> to vector<8xf32>
    %82 = vector.shape_cast %81 : vector<8xf32> to vector<8x1xf32>
    %83 = vector.broadcast %82 : vector<8x1xf32> to vector<8x8xf32>
    %84 = arith.subf %80, %83 : vector<8x8xf32>
    %85 = math.exp %84 : vector<8x8xf32>
    %cst_30 = arith.constant dense<0.000000e+00> : vector<8xf32>
    %86 = vector.multi_reduction <add>, %85, %cst_30 [1] : vector<8x8xf32> to vector<8xf32>
    %87 = vector.shape_cast %86 : vector<8xf32> to vector<8x1xf32>
    %88 = arith.truncf %85 : vector<8x8xf32> to vector<8x8xbf16>
    %cst_31 = arith.constant dense<0.000000e+00> : vector<8x8xf32>
    %89 = tpu.matmul %88, %79, %cst_31 {dimension_numbers = #tpu.dot_dimension_numbers<[1], [0], [0], [1], [0, 0, 1, 1], [], []>} : vector<8x8xbf16>, vector<8x8xbf16>, vector<8x8xf32> -> vector<8x8xf32>
    %90 = tpu.reciprocal %87 {approx = true} : vector<8x1xf32> -> vector<8x1xf32>
    %91 = arith.mulf %87, %90 : vector<8x1xf32>
    %cst_32 = arith.constant 2.000000e+00 : f32
    %92 = vector.broadcast %cst_32 : f32 to vector<8x1xf32>
    %93 = arith.subf %92, %91 : vector<8x1xf32>
    %94 = arith.mulf %90, %93 : vector<8x1xf32>
    %95 = vector.broadcast %94 : vector<8x1xf32> to vector<8x8xf32>
    %96 = arith.mulf %89, %95 : vector<8x8xf32>
    %97 = arith.truncf %96 : vector<8x8xf32> to vector<8x8xbf16>
    %c0_33 = arith.constant 0 : index
    %c24 = arith.constant 24 : index
    %98 = vector.load %arg13[%c0_33, %c24] : memref<8x32xbf16, #tpu.memory_space<vmem>>, vector<8x8xbf16>
    tpu.vector_store %arg13[%c0_33, %c24], %97 {strides = array<i32>} : memref<8x32xbf16, #tpu.memory_space<vmem>>, vector<8x8xbf16>,
    %c0_34 = arith.constant 0 : index
    %c0_35 = arith.constant 0 : index
    %99 = vector.load %arg13[%c0_34, %c0_35] : memref<8x32xbf16, #tpu.memory_space<vmem>>, vector<8x32xbf16>
    %c0_36 = arith.constant 0 : index
    %c0_37 = arith.constant 0 : index
    %100 = vector.load %arg8[%c0_36, %c0_37] : memref<32x32xbf16, #tpu.memory_space<vmem>>, vector<32x32xbf16>
    %cst_38 = arith.constant dense<0.000000e+00> : vector<8x32xf32>
    %101 = tpu.matmul %99, %100, %cst_38 {dimension_numbers = #tpu.dot_dimension_numbers<[1], [0], [0], [1], [0, 0, 1, 1], [], []>} : vector<8x32xbf16>, vector<32x32xbf16>, vector<8x32xf32> -> vector<8x32xf32>
    %c0_39 = arith.constant 0 : index
    %c0_40 = arith.constant 0 : index
    %102 = vector.load %arg9[%c0_39, %c0_40] : memref<1x32xf32, #tpu.memory_space<vmem>>, vector<1x32xf32>
    %103 = vector.broadcast %102 : vector<1x32xf32> to vector<8x32xf32>
    %104 = arith.addf %101, %103 : vector<8x32xf32>
    %c0_41 = arith.constant 0 : index
    %c0_42 = arith.constant 0 : index
    %c0_43 = arith.constant 0 : index
    %105 = vector.load %arg10[%c0_41, %c0_42, %c0_43] : memref<1x8x32xf32, #tpu.memory_space<vmem>>, vector<1x8x32xf32>
    %106 = vector.shape_cast %105 : vector<1x8x32xf32> to vector<8x32xf32>
    %107 = vector.shape_cast %104 : vector<8x32xf32> to vector<1x8x32xf32>
    tpu.vector_store %arg10[%c0_41, %c0_42, %c0_43], %107 {strides = array<i32>} : memref<1x8x32xf32, #tpu.memory_space<vmem>>, vector<1x8x32xf32>,
    return
  }
  func.func @transform_0(%arg0: i32, %arg1: i32) -> (i32, i32, i32) {
    %c0_i32 = arith.constant 0 : i32
    %c0_i32_0 = arith.constant 0 : i32
    return %arg0, %arg1, %c0_i32 : i32, i32, i32
  }
  func.func @transform_1(%arg0: i32, %arg1: i32) -> (i32, i32, i32) {
    %c0_i32 = arith.constant 0 : i32
    %c0_i32_0 = arith.constant 0 : i32
    %c0_i32_1 = arith.constant 0 : i32
    return %arg0, %c0_i32, %c0_i32_0 : i32, i32, i32
  }
  func.func @transform_2(%arg0: i32, %arg1: i32) -> (i32, i32, i32) {
    %c0_i32 = arith.constant 0 : i32
    %c0_i32_0 = arith.constant 0 : i32
    %c0_i32_1 = arith.constant 0 : i32
    return %arg0, %c0_i32, %c0_i32_0 : i32, i32, i32
  }
  func.func @transform_3(%arg0: i32, %arg1: i32) -> (i32, i32) {
    %c0_i32 = arith.constant 0 : i32
    %c0_i32_0 = arith.constant 0 : i32
    %c0_i32_1 = arith.constant 0 : i32
    return %c0_i32, %c0_i32_0 : i32, i32
  }
  func.func @transform_4(%arg0: i32, %arg1: i32) -> (i32, i32) {
    %c0_i32 = arith.constant 0 : i32
    %c0_i32_0 = arith.constant 0 : i32
    %c0_i32_1 = arith.constant 0 : i32
    return %c0_i32, %c0_i32_0 : i32, i32
  }
  func.func @transform_5(%arg0: i32, %arg1: i32) -> (i32, i32) {
    %c0_i32 = arith.constant 0 : i32
    %c0_i32_0 = arith.constant 0 : i32
    %c0_i32_1 = arith.constant 0 : i32
    return %c0_i32, %c0_i32_0 : i32, i32
  }
  func.func @transform_6(%arg0: i32, %arg1: i32) -> (i32, i32) {
    %c0_i32 = arith.constant 0 : i32
    %c0_i32_0 = arith.constant 0 : i32
    %c0_i32_1 = arith.constant 0 : i32
    return %c0_i32, %c0_i32_0 : i32, i32
  }
  func.func @transform_7(%arg0: i32, %arg1: i32) -> (i32, i32) {
    %c0_i32 = arith.constant 0 : i32
    %c0_i32_0 = arith.constant 0 : i32
    %c0_i32_1 = arith.constant 0 : i32
    return %c0_i32, %c0_i32_0 : i32, i32
  }
  func.func @transform_8(%arg0: i32, %arg1: i32) -> (i32, i32, i32) {
    %c0_i32 = arith.constant 0 : i32
    %c0_i32_0 = arith.constant 0 : i32
    return %arg0, %arg1, %c0_i32 : i32, i32, i32
  }
}

module attributes {stable_mosaic.version = 11 : i64} {
  func.func @_fused_mha_kernel(%arg0: i32, %arg1: i32, %arg2: memref<1x8x32xf32, #tpu.memory_space<vmem>>, %arg3: memref<1x8x32xf32, #tpu.memory_space<vmem>>, %arg4: memref<1x8x32xf32, #tpu.memory_space<vmem>>, %arg5: memref<32x32xbf16, #tpu.memory_space<vmem>>, %arg6: memref<32x32xbf16, #tpu.memory_space<vmem>>, %arg7: memref<32x32xbf16, #tpu.memory_space<vmem>>, %arg8: memref<32x32xbf16, #tpu.memory_space<vmem>>, %arg9: memref<1x32xf32, #tpu.memory_space<vmem>>, %arg10: memref<1x8x32xf32, #tpu.memory_space<vmem>>, %arg11: memref<8x32xbf16, #tpu.memory_space<vmem>>, %arg12: memref<8x32xbf16, #tpu.memory_space<vmem>>, %arg13: memref<8x32xbf16, #tpu.memory_space<vmem>>) attributes {dimension_semantics = [#tpu.dimension_semantics<parallel>, #tpu.dimension_semantics<arbitrary>], iteration_bounds = array<i64: 2, 1>, scalar_prefetch = 0 : i64, scratch_operands = 3 : i64, tpu.core_type = #tpu.core_type<tc>, window_params = [{transform_indices = @transform_0, window_bounds = array<i64: 1, 8, 32>}, {transform_indices = @transform_1, window_bounds = array<i64: 1, 8, 32>}, {transform_indices = @transform_2, window_bounds = array<i64: 1, 8, 32>}, {pipeline_mode = #tpu.pipeline_mode<synchronous>, transform_indices = @transform_3, window_bounds = array<i64: 32, 32>}, {pipeline_mode = #tpu.pipeline_mode<synchronous>, transform_indices = @transform_4, window_bounds = array<i64: 32, 32>}, {pipeline_mode = #tpu.pipeline_mode<synchronous>, transform_indices = @transform_5, window_bounds = array<i64: 32, 32>}, {pipeline_mode = #tpu.pipeline_mode<synchronous>, transform_indices = @transform_6, window_bounds = array<i64: 32, 32>}, {pipeline_mode = #tpu.pipeline_mode<synchronous>, transform_indices = @transform_7, window_bounds = array<i64: 1, 32>}, {transform_indices = @transform_8, window_bounds = array<i64: 1, 8, 32>}]} {
    %c0_i32 = arith.constant 0 : i32
    %0 = arith.cmpi eq, %arg1, %c0_i32 : i32
    %1 = arith.extui %0 : i1 to i32
    %c0_i32_0 = arith.constant 0 : i32
    %2 = arith.cmpi ne, %1, %c0_i32_0 : i32
    scf.if %2 {
      %c0_44 = arith.constant 0 : index
      %c0_45 = arith.constant 0 : index
      %c0_46 = arith.constant 0 : index
      %108 = vector.load %arg3[%c0_44, %c0_45, %c0_46] : memref<1x8x32xf32, #tpu.memory_space<vmem>>, vector<1x8x32xf32>
      %109 = vector.shape_cast %108 : vector<1x8x32xf32> to vector<8x32xf32>
      %110 = arith.truncf %109 : vector<8x32xf32> to vector<8x32xbf16>
      %c0_47 = arith.constant 0 : index
      %c0_48 = arith.constant 0 : index
      %c0_49 = arith.constant 0 : index
      %111 = vector.load %arg4[%c0_47, %c0_48, %c0_49] : memref<1x8x32xf32, #tpu.memory_space<vmem>>, vector<1x8x32xf32>
      %112 = vector.shape_cast %111 : vector<1x8x32xf32> to vector<8x32xf32>
      %113 = arith.truncf %112 : vector<8x32xf32> to vector<8x32xbf16>
      %c0_50 = arith.constant 0 : index
      %c0_51 = arith.constant 0 : index
      %114 = vector.load %arg6[%c0_50, %c0_51] : memref<32x32xbf16, #tpu.memory_space<vmem>>, vector<32x32xbf16>
      %cst_52 = arith.constant dense<0.000000e+00> : vector<8x32xf32>
      %115 = tpu.matmul %110, %114, %cst_52 {dimension_numbers = #tpu.dot_dimension_numbers<[1], [0], [0], [1], [0, 0, 1, 1], [], []>} : vector<8x32xbf16>, vector<32x32xbf16>, vector<8x32xf32> -> vector<8x32xf32>
      %116 = arith.truncf %115 : vector<8x32xf32> to vector<8x32xbf16>
      %c0_53 = arith.constant 0 : index
      %c0_54 = arith.constant 0 : index
      %117 = vector.load %arg11[%c0_53, %c0_54] : memref<8x32xbf16, #tpu.memory_space<vmem>>, vector<8x32xbf16>
      tpu.vector_store %arg11[%c0_53, %c0_54], %116 {strides = array<i32>} : memref<8x32xbf16, #tpu.memory_space<vmem>>, vector<8x32xbf16>,
      %c0_55 = arith.constant 0 : index
      %c0_56 = arith.constant 0 : index
      %118 = vector.load %arg7[%c0_55, %c0_56] : memref<32x32xbf16, #tpu.memory_space<vmem>>, vector<32x32xbf16>
      %cst_57 = arith.constant dense<0.000000e+00> : vector<8x32xf32>
      %119 = tpu.matmul %113, %118, %cst_57 {dimension_numbers = #tpu.dot_dimension_numbers<[1], [0], [0], [1], [0, 0, 1, 1], [], []>} : vector<8x32xbf16>, vector<32x32xbf16>, vector<8x32xf32> -> vector<8x32xf32>
      %120 = arith.truncf %119 : vector<8x32xf32> to vector<8x32xbf16>
      %c0_58 = arith.constant 0 : index
      %c0_59 = arith.constant 0 : index
      %121 = vector.load %arg12[%c0_58, %c0_59] : memref<8x32xbf16, #tpu.memory_space<vmem>>, vector<8x32xbf16>
      tpu.vector_store %arg12[%c0_58, %c0_59], %120 {strides = array<i32>} : memref<8x32xbf16, #tpu.memory_space<vmem>>, vector<8x32xbf16>,
    } else {
    }
    %c0 = arith.constant 0 : index
    %c0_1 = arith.constant 0 : index
    %c0_2 = arith.constant 0 : index
    %3 = vector.load %arg2[%c0, %c0_1, %c0_2] : memref<1x8x32xf32, #tpu.memory_space<vmem>>, vector<1x8x32xf32>
    %4 = vector.shape_cast %3 : vector<1x8x32xf32> to vector<8x32xf32>
    %5 = arith.truncf %4 : vector<8x32xf32> to vector<8x32xbf16>
    %c0_3 = arith.constant 0 : index
    %c0_4 = arith.constant 0 : index
    %6 = vector.load %arg5[%c0_3, %c0_4] : memref<32x32xbf16, #tpu.memory_space<vmem>>, vector<32x32xbf16>
    %cst = arith.constant dense<0.000000e+00> : vector<8x32xf32>
    %7 = tpu.matmul %5, %6, %cst {dimension_numbers = #tpu.dot_dimension_numbers<[1], [0], [0], [1], [0, 0, 1, 1], [], []>} : vector<8x32xbf16>, vector<32x32xbf16>, vector<8x32xf32> -> vector<8x32xf32>
    %8 = arith.truncf %7 : vector<8x32xf32> to vector<8x32xbf16>
    %c0_5 = arith.constant 0 : index
    %c0_6 = arith.constant 0 : index
    %9 = vector.load %arg11[%c0_5, %c0_6] : memref<8x32xbf16, #tpu.memory_space<vmem>>, vector<8x32xbf16>
    %c0_7 = arith.constant 0 : index
    %c0_8 = arith.constant 0 : index
    %10 = vector.load %arg12[%c0_7, %c0_8] : memref<8x32xbf16, #tpu.memory_space<vmem>>, vector<8x32xbf16>
    %11 = vector.extract_strided_slice %8 {offsets = [0, 0], sizes = [8, 8], strides = [1, 1]} : vector<8x32xbf16> to vector<8x8xbf16>
    %12 = vector.extract_strided_slice %9 {offsets = [0, 0], sizes = [8, 8], strides = [1, 1]} : vector<8x32xbf16> to vector<8x8xbf16>
    %13 = vector.extract_strided_slice %10 {offsets = [0, 0], sizes = [8, 8], strides = [1, 1]} : vector<8x32xbf16> to vector<8x8xbf16>
    %cst_9 = arith.constant dense<0.000000e+00> : vector<8x8xf32>
    %14 = tpu.matmul %11, %12, %cst_9 {dimension_numbers = #tpu.dot_dimension_numbers<[1], [1], [0], [0], [0, 0, 1, 0], [], []>} : vector<8x8xbf16>, vector<8x8xbf16>, vector<8x8xf32> -> vector<8x8xf32>
    %cst_10 = arith.constant dense<0xFF800000> : vector<8xf32>
    %15 = vector.multi_reduction <maximumf>, %14, %cst_10 [1] : vector<8x8xf32> to vector<8xf32>
    %16 = vector.shape_cast %15 : vector<8xf32> to vector<8x1xf32>
    %17 = vector.broadcast %16 : vector<8x1xf32> to vector<8x8xf32>
    %18 = arith.subf %14, %17 : vector<8x8xf32>
    %19 = math.exp %18 : vector<8x8xf32>
    %cst_11 = arith.constant dense<0.000000e+00> : vector<8xf32>
    %20 = vector.multi_reduction <add>, %19, %cst_11 [1] : vector<8x8xf32> to vector<8xf32>
    %21 = vector.shape_cast %20 : vector<8xf32> to vector<8x1xf32>
    %22 = arith.truncf %19 : vector<8x8xf32> to vector<8x8xbf16>
    %cst_12 = arith.constant dense<0.000000e+00> : vector<8x8xf32>
    %23 = tpu.matmul %22, %13, %cst_12 {dimension_numbers = #tpu.dot_dimension_numbers<[1], [0], [0], [1], [0, 0, 1, 1], [], []>} : vector<8x8xbf16>, vector<8x8xbf16>, vector<8x8xf32> -> vector<8x8xf32>
    %24 = tpu.reciprocal %21 {approx = true} : vector<8x1xf32> -> vector<8x1xf32>
    %25 = arith.mulf %21, %24 : vector<8x1xf32>
    %cst_13 = arith.constant 2.000000e+00 : f32
    %26 = vector.broadcast %cst_13 : f32 to vector<8x1xf32>
    %27 = arith.subf %26, %25 : vector<8x1xf32>
    %28 = arith.mulf %24, %27 : vector<8x1xf32>
    %29 = vector.broadcast %28 : vector<8x1xf32> to vector<8x8xf32>
    %30 = arith.mulf %23, %29 : vector<8x8xf32>
    %31 = arith.truncf %30 : vector<8x8xf32> to vector<8x8xbf16>
    %c0_14 = arith.constant 0 : index
    %c0_15 = arith.constant 0 : index
    %32 = vector.load %arg13[%c0_14, %c0_15] : memref<8x32xbf16, #tpu.memory_space<vmem>>, vector<8x8xbf16>
    tpu.vector_store %arg13[%c0_14, %c0_15], %31 {strides = array<i32>} : memref<8x32xbf16, #tpu.memory_space<vmem>>, vector<8x8xbf16>,
    %33 = vector.extract_strided_slice %8 {offsets = [0, 8], sizes = [8, 8], strides = [1, 1]} : vector<8x32xbf16> to vector<8x8xbf16>
    %34 = vector.extract_strided_slice %9 {offsets = [0, 8], sizes = [8, 8], strides = [1, 1]} : vector<8x32xbf16> to vector<8x8xbf16>
    %35 = vector.extract_strided_slice %10 {offsets = [0, 8], sizes = [8, 8], strides = [1, 1]} : vector<8x32xbf16> to vector<8x8xbf16>
    %cst_16 = arith.constant dense<0.000000e+00> : vector<8x8xf32>
    %36 = tpu.matmul %33, %34, %cst_16 {dimension_numbers = #tpu.dot_dimension_numbers<[1], [1], [0], [0], [0, 0, 1, 0], [], []>} : vector<8x8xbf16>, vector<8x8xbf16>, vector<8x8xf32> -> vector<8x8xf32>
    %cst_17 = arith.constant dense<0xFF800000> : vector<8xf32>
    %37 = vector.multi_reduction <maximumf>, %36, %cst_17 [1] : vector<8x8xf32> to vector<8xf32>
    %38 = vector.shape_cast %37 : vector<8xf32> to vector<8x1xf32>
    %39 = vector.broadcast %38 : vector<8x1xf32> to vector<8x8xf32>
    %40 = arith.subf %36, %39 : vector<8x8xf32>
    %41 = math.exp %40 : vector<8x8xf32>
    %cst_18 = arith.constant dense<0.000000e+00> : vector<8xf32>
    %42 = vector.multi_reduction <add>, %41, %cst_18 [1] : vector<8x8xf32> to vector<8xf32>
    %43 = vector.shape_cast %42 : vector<8xf32> to vector<8x1xf32>
    %44 = arith.truncf %41 : vector<8x8xf32> to vector<8x8xbf16>
    %cst_19 = arith.constant dense<0.000000e+00> : vector<8x8xf32>
    %45 = tpu.matmul %44, %35, %cst_19 {dimension_numbers = #tpu.dot_dimension_numbers<[1], [0], [0], [1], [0, 0, 1, 1], [], []>} : vector<8x8xbf16>, vector<8x8xbf16>, vector<8x8xf32> -> vector<8x8xf32>
    %46 = tpu.reciprocal %43 {approx = true} : vector<8x1xf32> -> vector<8x1xf32>
    %47 = arith.mulf %43, %46 : vector<8x1xf32>
    %cst_20 = arith.constant 2.000000e+00 : f32
    %48 = vector.broadcast %cst_20 : f32 to vector<8x1xf32>
    %49 = arith.subf %48, %47 : vector<8x1xf32>
    %50 = arith.mulf %46, %49 : vector<8x1xf32>
    %51 = vector.broadcast %50 : vector<8x1xf32> to vector<8x8xf32>
    %52 = arith.mulf %45, %51 : vector<8x8xf32>
    %53 = arith.truncf %52 : vector<8x8xf32> to vector<8x8xbf16>
    %c0_21 = arith.constant 0 : index
    %c8 = arith.constant 8 : index
    %54 = vector.load %arg13[%c0_21, %c8] : memref<8x32xbf16, #tpu.memory_space<vmem>>, vector<8x8xbf16>
    tpu.vector_store %arg13[%c0_21, %c8], %53 {strides = array<i32>} : memref<8x32xbf16, #tpu.memory_space<vmem>>, vector<8x8xbf16>,
    %55 = vector.extract_strided_slice %8 {offsets = [0, 16], sizes = [8, 8], strides = [1, 1]} : vector<8x32xbf16> to vector<8x8xbf16>
    %56 = vector.extract_strided_slice %9 {offsets = [0, 16], sizes = [8, 8], strides = [1, 1]} : vector<8x32xbf16> to vector<8x8xbf16>
    %57 = vector.extract_strided_slice %10 {offsets = [0, 16], sizes = [8, 8], strides = [1, 1]} : vector<8x32xbf16> to vector<8x8xbf16>
    %cst_22 = arith.constant dense<0.000000e+00> : vector<8x8xf32>
    %58 = tpu.matmul %55, %56, %cst_22 {dimension_numbers = #tpu.dot_dimension_numbers<[1], [1], [0], [0], [0, 0, 1, 0], [], []>} : vector<8x8xbf16>, vector<8x8xbf16>, vector<8x8xf32> -> vector<8x8xf32>
    %cst_23 = arith.constant dense<0xFF800000> : vector<8xf32>
    %59 = vector.multi_reduction <maximumf>, %58, %cst_23 [1] : vector<8x8xf32> to vector<8xf32>
    %60 = vector.shape_cast %59 : vector<8xf32> to vector<8x1xf32>
    %61 = vector.broadcast %60 : vector<8x1xf32> to vector<8x8xf32>
    %62 = arith.subf %58, %61 : vector<8x8xf32>
    %63 = math.exp %62 : vector<8x8xf32>
    %cst_24 = arith.constant dense<0.000000e+00> : vector<8xf32>
    %64 = vector.multi_reduction <add>, %63, %cst_24 [1] : vector<8x8xf32> to vector<8xf32>
    %65 = vector.shape_cast %64 : vector<8xf32> to vector<8x1xf32>
    %66 = arith.truncf %63 : vector<8x8xf32> to vector<8x8xbf16>
    %cst_25 = arith.constant dense<0.000000e+00> : vector<8x8xf32>
    %67 = tpu.matmul %66, %57, %cst_25 {dimension_numbers = #tpu.dot_dimension_numbers<[1], [0], [0], [1], [0, 0, 1, 1], [], []>} : vector<8x8xbf16>, vector<8x8xbf16>, vector<8x8xf32> -> vector<8x8xf32>
    %68 = tpu.reciprocal %65 {approx = true} : vector<8x1xf32> -> vector<8x1xf32>
    %69 = arith.mulf %65, %68 : vector<8x1xf32>
    %cst_26 = arith.constant 2.000000e+00 : f32
    %70 = vector.broadcast %cst_26 : f32 to vector<8x1xf32>
    %71 = arith.subf %70, %69 : vector<8x1xf32>
    %72 = arith.mulf %68, %71 : vector<8x1xf32>
    %73 = vector.broadcast %72 : vector<8x1xf32> to vector<8x8xf32>
    %74 = arith.mulf %67, %73 : vector<8x8xf32>
    %75 = arith.truncf %74 : vector<8x8xf32> to vector<8x8xbf16>
    %c0_27 = arith.constant 0 : index
    %c16 = arith.constant 16 : index
    %76 = vector.load %arg13[%c0_27, %c16] : memref<8x32xbf16, #tpu.memory_space<vmem>>, vector<8x8xbf16>
    tpu.vector_store %arg13[%c0_27, %c16], %75 {strides = array<i32>} : memref<8x32xbf16, #tpu.memory_space<vmem>>, vector<8x8xbf16>,
    %77 = vector.extract_strided_slice %8 {offsets = [0, 24], sizes = [8, 8], strides = [1, 1]} : vector<8x32xbf16> to vector<8x8xbf16>
    %78 = vector.extract_strided_slice %9 {offsets = [0, 24], sizes = [8, 8], strides = [1, 1]} : vector<8x32xbf16> to vector<8x8xbf16>
    %79 = vector.extract_strided_slice %10 {offsets = [0, 24], sizes = [8, 8], strides = [1, 1]} : vector<8x32xbf16> to vector<8x8xbf16>
    %cst_28 = arith.constant dense<0.000000e+00> : vector<8x8xf32>
    %80 = tpu.matmul %77, %78, %cst_28 {dimension_numbers = #tpu.dot_dimension_numbers<[1], [1], [0], [0], [0, 0, 1, 0], [], []>} : vector<8x8xbf16>, vector<8x8xbf16>, vector<8x8xf32> -> vector<8x8xf32>
    %cst_29 = arith.constant dense<0xFF800000> : vector<8xf32>
    %81 = vector.multi_reduction <maximumf>, %80, %cst_29 [1] : vector<8x8xf32> to vector<8xf32>
    %82 = vector.shape_cast %81 : vector<8xf32> to vector<8x1xf32>
    %83 = vector.broadcast %82 : vector<8x1xf32> to vector<8x8xf32>
    %84 = arith.subf %80, %83 : vector<8x8xf32>
    %85 = math.exp %84 : vector<8x8xf32>
    %cst_30 = arith.constant dense<0.000000e+00> : vector<8xf32>
    %86 = vector.multi_reduction <add>, %85, %cst_30 [1] : vector<8x8xf32> to vector<8xf32>
    %87 = vector.shape_cast %86 : vector<8xf32> to vector<8x1xf32>
    %88 = arith.truncf %85 : vector<8x8xf32> to vector<8x8xbf16>
    %cst_31 = arith.constant dense<0.000000e+00> : vector<8x8xf32>
    %89 = tpu.matmul %88, %79, %cst_31 {dimension_numbers = #tpu.dot_dimension_numbers<[1], [0], [0], [1], [0, 0, 1, 1], [], []>} : vector<8x8xbf16>, vector<8x8xbf16>, vector<8x8xf32> -> vector<8x8xf32>
    %90 = tpu.reciprocal %87 {approx = true} : vector<8x1xf32> -> vector<8x1xf32>
    %91 = arith.mulf %87, %90 : vector<8x1xf32>
    %cst_32 = arith.constant 2.000000e+00 : f32
    %92 = vector.broadcast %cst_32 : f32 to vector<8x1xf32>
    %93 = arith.subf %92, %91 : vector<8x1xf32>
    %94 = arith.mulf %90, %93 : vector<8x1xf32>
    %95 = vector.broadcast %94 : vector<8x1xf32> to vector<8x8xf32>
    %96 = arith.mulf %89, %95 : vector<8x8xf32>
    %97 = arith.truncf %96 : vector<8x8xf32> to vector<8x8xbf16>
    %c0_33 = arith.constant 0 : index
    %c24 = arith.constant 24 : index
    %98 = vector.load %arg13[%c0_33, %c24] : memref<8x32xbf16, #tpu.memory_space<vmem>>, vector<8x8xbf16>
    tpu.vector_store %arg13[%c0_33, %c24], %97 {strides = array<i32>} : memref<8x32xbf16, #tpu.memory_space<vmem>>, vector<8x8xbf16>,
    %c0_34 = arith.constant 0 : index
    %c0_35 = arith.constant 0 : index
    %99 = vector.load %arg13[%c0_34, %c0_35] : memref<8x32xbf16, #tpu.memory_space<vmem>>, vector<8x32xbf16>
    %c0_36 = arith.constant 0 : index
    %c0_37 = arith.constant 0 : index
    %100 = vector.load %arg8[%c0_36, %c0_37] : memref<32x32xbf16, #tpu.memory_space<vmem>>, vector<32x32xbf16>
    %cst_38 = arith.constant dense<0.000000e+00> : vector<8x32xf32>
    %101 = tpu.matmul %99, %100, %cst_38 {dimension_numbers = #tpu.dot_dimension_numbers<[1], [0], [0], [1], [0, 0, 1, 1], [], []>} : vector<8x32xbf16>, vector<32x32xbf16>, vector<8x32xf32> -> vector<8x32xf32>
    %c0_39 = arith.constant 0 : index
    %c0_40 = arith.constant 0 : index
    %102 = vector.load %arg9[%c0_39, %c0_40] : memref<1x32xf32, #tpu.memory_space<vmem>>, vector<1x32xf32>
    %103 = vector.broadcast %102 : vector<1x32xf32> to vector<8x32xf32>
    %104 = arith.addf %101, %103 : vector<8x32xf32>
    %c0_41 = arith.constant 0 : index
    %c0_42 = arith.constant 0 : index
    %c0_43 = arith.constant 0 : index
    %105 = vector.load %arg10[%c0_41, %c0_42, %c0_43] : memref<1x8x32xf32, #tpu.memory_space<vmem>>, vector<1x8x32xf32>
    %106 = vector.shape_cast %105 : vector<1x8x32xf32> to vector<8x32xf32>
    %107 = vector.shape_cast %104 : vector<8x32xf32> to vector<1x8x32xf32>
    tpu.vector_store %arg10[%c0_41, %c0_42, %c0_43], %107 {strides = array<i32>} : memref<1x8x32xf32, #tpu.memory_space<vmem>>, vector<1x8x32xf32>,
    return
  }
  func.func @transform_0(%arg0: i32, %arg1: i32) -> (i32, i32, i32) {
    %c0_i32 = arith.constant 0 : i32
    %c0_i32_0 = arith.constant 0 : i32
    return %arg0, %arg1, %c0_i32 : i32, i32, i32
  }
  func.func @transform_1(%arg0: i32, %arg1: i32) -> (i32, i32, i32) {
    %c0_i32 = arith.constant 0 : i32
    %c0_i32_0 = arith.constant 0 : i32
    %c0_i32_1 = arith.constant 0 : i32
    return %arg0, %c0_i32, %c0_i32_0 : i32, i32, i32
  }
  func.func @transform_2(%arg0: i32, %arg1: i32) -> (i32, i32, i32) {
    %c0_i32 = arith.constant 0 : i32
    %c0_i32_0 = arith.constant 0 : i32
    %c0_i32_1 = arith.constant 0 : i32
    return %arg0, %c0_i32, %c0_i32_0 : i32, i32, i32
  }
  func.func @transform_3(%arg0: i32, %arg1: i32) -> (i32, i32) {
    %c0_i32 = arith.constant 0 : i32
    %c0_i32_0 = arith.constant 0 : i32
    %c0_i32_1 = arith.constant 0 : i32
    return %c0_i32, %c0_i32_0 : i32, i32
  }
  func.func @transform_4(%arg0: i32, %arg1: i32) -> (i32, i32) {
    %c0_i32 = arith.constant 0 : i32
    %c0_i32_0 = arith.constant 0 : i32
    %c0_i32_1 = arith.constant 0 : i32
    return %c0_i32, %c0_i32_0 : i32, i32
  }
  func.func @transform_5(%arg0: i32, %arg1: i32) -> (i32, i32) {
    %c0_i32 = arith.constant 0 : i32
    %c0_i32_0 = arith.constant 0 : i32
    %c0_i32_1 = arith.constant 0 : i32
    return %c0_i32, %c0_i32_0 : i32, i32
  }
  func.func @transform_6(%arg0: i32, %arg1: i32) -> (i32, i32) {
    %c0_i32 = arith.constant 0 : i32
    %c0_i32_0 = arith.constant 0 : i32
    %c0_i32_1 = arith.constant 0 : i32
    return %c0_i32, %c0_i32_0 : i32, i32
  }
  func.func @transform_7(%arg0: i32, %arg1: i32) -> (i32, i32) {
    %c0_i32 = arith.constant 0 : i32
    %c0_i32_0 = arith.constant 0 : i32
    %c0_i32_1 = arith.constant 0 : i32
    return %c0_i32, %c0_i32_0 : i32, i32
  }
  func.func @transform_8(%arg0: i32, %arg1: i32) -> (i32, i32, i32) {
    %c0_i32 = arith.constant 0 : i32
    %c0_i32_0 = arith.constant 0 : i32
    return %arg0, %arg1, %c0_i32 : i32, i32, i32
  }
}

</mosaic_0001>

<bundles_post_ra>
// kernel: tpu_custom_call.1
= control target key start
LH: loop header
LB: loop body
LE: loop exit
PB: predicated region body
PF: predicated region fallthrough
CT: control target
= control target key end

     0   :  { %s1921_s0 = inlined_call_operand.hbm [shape: f32[2,8,32], index: 0, kind: input, shape index: {}]   ;;  %s1922_s1 = inlined_call_operand.hbm [shape: f32[2,8,32], index: 1, kind: input, shape index: {}]   ;;  %s1923_s2 = inlined_call_operand.hbm [shape: f32[2,8,32], index: 2, kind: input, shape index: {}]   ;;  %s1924_s3 = inlined_call_operand.hbm [shape: bf16[32,32], index: 3, kind: input, shape index: {}]   ;;  %s1925_s4 = inlined_call_operand.hbm [shape: bf16[32,32], index: 4, kind: input, shape index: {}]   ;;  %s1926_s5 = inlined_call_operand.hbm [shape: bf16[32,32], index: 5, kind: input, shape index: {}]   ;;  %s1927_s6 = inlined_call_operand.hbm [shape: bf16[32,32], index: 6, kind: input, shape index: {}]   ;;  %s1928_s7 = inlined_call_operand.vmem [shape: f32[1,32], index: 7, kind: input, shape index: {}]   ;;  %s1929_s8 = inlined_call_operand.hbm [shape: f32[2,8,32], index: 8, kind: output, shape index: {}]  }
   0x1   :  { %1940 = sst [smem:[#allocation28_spill]] %s1921_s0 }
   0x2   :  { %1941 = sst [smem:[#allocation29_spill]] %s1922_s1 }
   0x3   :  { %1942 = sst [smem:[#allocation30_spill]] %s1924_s3 }
   0x4   :  { %1943 = sst [smem:[#allocation31_spill]] %s1925_s4 }
   0x5   :  { %1944 = sst [smem:[#allocation32_spill]] %s1926_s5 }
   0x6   :  { %1945 = sst [smem:[#allocation33_spill]] %s1927_s6 }
   0x7   :  { %13 = vsyncpa [#allocation6], 0 }
   0x8   :  { %15 = vsyncpa [#allocation6 + $0x1], 0 }
   0x9   :  { %16 = vsyncpa [#allocation9], 0 }
   0xa   :  { %18 = vsyncpa [#allocation9 + $0x1], 0 }
   0xb   :  { %19 = vsyncpa [#allocation12], 0 }
   0xc   :  { %20 = vsyncpa [#allocation15], 0 }
   0xd   :  { %21 = vsyncpa [#allocation7], 0 }
   0xe   :  { %23 = vsyncpa [#allocation7 + $0x1], 0  ;;  %s1659_s27 = smov 0   ;;  %s1661_s28 = smov 0  }
   0xf   :  { %s1663_s29 = smov 0   ;;  %s1665_s30 = smov 0  }
  0x10   :  { %s1667_s9 = smov 0   ;;  %s1669_s10 = smov 0  }
  0x11 LB: > { %1946 = sst [smem:[#allocation23_spill]] %s1596_s9  ;;  %s1690_s11 = sadd.s32 4294967295, %s1600_s10   ;;  %s1600_s10 = sphi %s1669_s10, %s29_s10   ;;  %s1596_s9 = sphi %s1667_s9, %s1971_s9   ;;  %s1592_s30 = sphi %s1665_s30, %s1970_s30   ;;  %s1588_s29 = sphi %s1663_s29, %s1974_s29   ;;  %s1584_s28 = sphi %s1661_s28, %s1973_s28   ;;  %s1580_s27 = sphi %s1659_s27, %s1972_s27  }
  0x12   : > { %1947 = sst [smem:[#allocation24_spill]] %s1600_s10  ;;  %p1081_p0 = scmp.ge.s32.totalorder %s1600_s10, 1 }
  0x13   : > { %p64_p1 = scmp.eq.s32.totalorder %s1690_s11, 0  ;;  %p259_p2 = scmp.lt.s32.totalorder %s1600_s10, 3 }
  0x14   : > { %s1948_s3 = sld [smem:[#allocation30_spill]]  ;;  %s1602_s16 = smov [#allocation11]  }
  0x15   : > { %p1698_p3 = pnand %p1081_p0, %p259_p2  ;;  %s272_s17 = sshll.u32 %s1602_s16, 4  ;;  %s273_s17 = int_to_ptr.vmem [resolvable:$true] %s272_s17 }
  0x16   : > { %p1086_p6 = scmp.ge.s32.totalorder %s1600_s10, 2  ;;  %s1951_s5 = sld [smem:[#allocation32_spill]] }
  0x17   : > { %p1182_p4 = pneg %p1698_p3  ;;  %s1930_s22 = smov 64  }
  0x18   : > { %s1932_s23 = smov 4   ;;  %s1605_s24 = smov [#allocation14]  }
  0x19   : > { %p1706_p5 = pnand %p1182_p4, %p64_p1  ;;  %s300_s25 = sshll.u32 %s1605_s24, 4  ;;  %s301_s25 = int_to_ptr.vmem [resolvable:$true] %s300_s25 }
  0x1a   : > { %s270_s14 = sshll.u32 %s1948_s3, 4  ;;  %s1080_s26 = sadd.s32 4294967294, %s1600_s10   ;;  %s271_s14 = int_to_ptr.hbm [resolvable:$true] %s270_s14 }
  0x1b   : > { %1185 = dma.hbm_to_vmem [thread:$0]  (!%p1706_p5), %s271_s14, 256, %s273_s17, [#allocation12], %s1930_s22, %s1930_s22, %s1932_s23  }
  0x1c   : > { %s298_s21 = sshll.u32 %s1951_s5, 4  ;;  %s41_s12 = sadd.s32 1, %s1596_s9  ;;  %s299_s21 = int_to_ptr.hbm [resolvable:$true] %s298_s21 }
  0x1d   : > { %1191 = dma.hbm_to_vmem [thread:$0]  (!%p1706_p5), %s299_s21, 256, %s301_s25, [#allocation15], %s1930_s22, %s1930_s22, %s1932_s23  }
  0x1e   : > { %p43_p7 = scmp.ge.s32.totalorder %s41_s12, 2  ;;  %s50_s13 = sadd.s32 1, %s1588_s29 }
  0x1f   : > { %p57_p8 = scmp.ne.s32.totalorder %s1588_s29, %s1584_s28  ;;  %p58_p9 = scmp.eq.s32.totalorder %s1600_s10, 0 }
  0x20   : > { %s1976_s12 = smov (%p43_p7, %s41_s12), 0  ;;  %p63_p11 = scmp.ne.s32.totalorder %s1584_s28, %s1580_s27 }
  0x21   : > { %1952 = sst [smem:[#allocation25_spill]] %s1976_s12  ;;  %p1732_p10 = por %p58_p9, %p57_p8 }
  0x22   : > { %s45_s16 = ssub.s32 %s1596_s9, %s1976_s12  ;;  %p246_p12 = scmp.eq.s32.totalorder %s1690_s11, 1 }
  0x23   : > { %p48_p13 = scmp.eq.s32.totalorder %s45_s16, 0  ;;  %p1743_p0 = por %p64_p1, %p63_p11 }
  0x24   : > { %p1747_p2 = por %p246_p12, %p57_p8  ;;  %p252_p4 = scmp.eq.s32.totalorder %s1080_s26, 1 }
  0x25   : > { %s1752_s20 = scalar_select %p48_p13, %s1588_s29, %s50_s13  }
  0x26   : > { %p1754_p7 = por %p252_p4, %p63_p11  ;;  %p1213_p9 = scmp.lt.s32.totalorder %s1600_s10, 2 }
  0x27   : > { %1956 = sst [smem:[#allocation26_spill]] %s1752_s20  ;;  %s1936_s24 = sand.u32 1, %s1588_s29  }
  0x28   : > { %s1957_s21 = scalar_select %p1754_p7, 1, 0 }
  0x29   : > { %s1761_s25 = sshll.u32 %s1596_s9, 3  ;;  %s1765_s16 = sshll.u32 %s1936_s24, 3 }
  0x2a   : > { %1958 = sst [smem:[#allocation27_spill]] %s1957_s21  ;;  %p1769_p8 = pnand %p1213_p9, %p1732_p10 }
  0x2b   : > { %s351_s26 = sand.u32 1, %s1600_s10   ;;  %s1960_s1 = sld [smem:[#allocation29_spill]] }
  0x2c   : > { %s355_s5 = scalar_lea.vmem [#allocation8], %s1765_s16  ;;  %s1961_s4 = sld [smem:[#allocation31_spill]] }
  0x2d   : > { %s363_s12 = sshll.u32 %s355_s5, 4  ;;  %s352_s21 = scalar_lea.sflag [#allocation9], %s351_s26  ;;  %s364_s12 = int_to_ptr.vmem [resolvable:$true] %s363_s12 }
  0x2e   : > { %s1606_s10 = smov [#allocation13]   ;;  %s1962_s6 = sld [smem:[#allocation33_spill]] }
  0x2f   : > { %s286_s23 = sshll.u32 %s1606_s10, 4  ;;  %s1963_s5 = smov 4   ;;  %s287_s23 = int_to_ptr.vmem [resolvable:$true] %s286_s23 }
  0x30   : > { %s1964_s24 = smov 64   ;;  %s1607_s26 = smov [#allocation16]  }
  0x31   : > { %s359_s3 = scalar_lea.hbm %s1960_s1, %s1761_s25  ;;  %s1965_s0 = sld [smem:[#allocation28_spill]] }
  0x32   : > { %s361_s9 = sshll.u32 %s359_s3, 4  ;;  %s284_s20 = sshll.u32 %s1961_s4, 4  ;;  %s362_s9 = int_to_ptr.hbm [resolvable:$true] %s361_s9  ;;  %s285_s20 = int_to_ptr.hbm [resolvable:$true] %s284_s20 }
  0x33   : > { %1201 = dma.hbm_to_vmem [thread:$0]  (!%p1769_p8), %s362_s9, 128, %s364_s12, %s352_s21  }
  0x34   : > { %s312_s3 = sshll.u32 %s1962_s6, 4  ;;  %s314_s9 = sshll.u32 %s1607_s26, 4  ;;  %s313_s3 = int_to_ptr.hbm [resolvable:$true] %s312_s3  ;;  %s315_s9 = int_to_ptr.vmem [resolvable:$true] %s314_s9 }
  0x35   : > { %1188 = dma.hbm_to_vmem [thread:$0]  (!%p1706_p5), %s285_s20, 256, %s287_s23, [#allocation12], %s1964_s24, %s1964_s24, %s1963_s5  }
  0x36   : > { %1194 = dma.hbm_to_vmem [thread:$0]  (!%p1706_p5), %s313_s3, 256, %s315_s9, [#allocation15], %s1964_s24, %s1964_s24, %s1963_s5  }
  0x37   : > { %s340_s10 = scalar_lea.hbm %s1965_s0, %s1761_s25  ;;  %s335_s13 = scalar_lea.vmem [#allocation5], %s1765_s16 }
  0x38   : > { %s342_s1 = sshll.u32 %s340_s10, 4  ;;  %s344_s4 = sshll.u32 %s335_s13, 4  ;;  %s343_s1 = int_to_ptr.hbm [resolvable:$true] %s342_s1  ;;  %s345_s4 = int_to_ptr.vmem [resolvable:$true] %s344_s4 }
  0x39   : > { %s1966_s6 = sand.u32 1, %s1588_s29   ;;  %s378_s12 = scalar_lea.hbm %s1923_s2, %s1761_s25 }
  0x3a   : > { %s332_s20 = scalar_lea.sflag [#allocation6], %s1966_s6  ;;  %s380_s14 = sshll.u32 %s378_s12, 4  ;;  %s381_s14 = int_to_ptr.hbm [resolvable:$true] %s380_s14 }
  0x3b   : > { %1198 = dma.hbm_to_vmem [thread:$0]  (!%p1769_p8), %s343_s1, 128, %s345_s4, %s332_s20  }
  0x3c   : > { %s374_s0 = scalar_lea.vmem [#allocation10], %s1765_s16  ;;  %391 = sbr.rel (%p1698_p3) target bundleno = 1009 (0x3f1), region = 52 }
  0x3d   : > { %s382_s18 = sshll.u32 %s374_s0, 4  ;;  %s1816_s3 = sand.u32 (!%p1698_p3), 1, %s1584_s28   ;;  %s383_s18 = int_to_ptr.vmem [resolvable:$true] %s382_s18 }
  0x3e   : > { %1204 = dma.hbm_to_vmem [thread:$0]  (!%p1769_p8), %s381_s14, 128, %s383_s18, %s352_s21  }
  0x3f   : > { %s1819_s4 = sshll.u32 (!%p1698_p3), %s1816_s3, 3  ;;  %s394_s6 = scalar_lea.sflag (!%p1698_p3), [#allocation6], %s1816_s3 }
  0x40   : > { %s397_s25 = scalar_lea.vmem (!%p1698_p3), [#allocation5], %s1819_s4 }
  0x41   : > { %1559 = dma.done.wait (%p1743_p0), %s394_s6, 128  }
  0x42   : > { %1561 = vsyncadd (%p1743_p0), %s394_s6, 4294967168  ;;  %s403_s0 = sand.u32 1, %s1690_s11   ;;  %s407_s22 = scalar_lea.vmem [#allocation8], %s1819_s4 }
  0x43   : > { %s404_s15 = scalar_lea.sflag [#allocation9], %s403_s0 }
  0x44   : > { %1563 = dma.done.wait (%p1743_p0), %s404_s15, 256  }
  0x45   : > { %1565 = vsyncadd (%p1743_p0), %s404_s15, 4294967040  ;;  %s417_s21 = scalar_lea.vmem [#allocation10], %s1819_s4 }
  0x46   : > { %1567 = dma.done.wait (%p64_p1), [#allocation12], 512  }
  0x47   : > { %1569 = vsyncadd (%p64_p1), [#allocation12], 4294966784 }
  0x48   : > { %1571 = dma.done.wait (%p64_p1), [#allocation15], 512  }
  0x49   : > { %1573 = vsyncadd (%p64_p1), [#allocation15], 4294966784  ;;  %v1151_v0 = vld [vmem:[#allocation13 + $0x8] sm:$0xff]  ;;  %v1155_v1 = vld [vmem:[#allocation11 + $0x8] sm:$0xff]  ;;  %vm506_vm0 = vcmask 261120   ;;  %vm524_vm1 = vcmask 257024  }
  0x4a   : > { %v1150_v2 = vld [vmem:[#allocation13] sm:$0xff]  ;;  %v1154_v3 = vld [vmem:[#allocation11] sm:$0xff]  ;;  %516 = vmatpush.bf16.msra.mxu0 %v1151_v0  ;;  %588 = vmatpush.bf16.msra.mxu2 %v1155_v1  ;;  %v1153_v8 = vld [vmem:[#allocation14 + $0x8] sm:$0xff]  ;;  %vm598_vm2 = vcmask 64512   ;;  %s1608_s11 = smov 112   ;;  %s1609_s17 = smov 120  }
  0x4b   : > { %v486_v4 = vld [vmem:[%s407_s22] sm:$0xff]  ;;  %v560_v5 = vld [vmem:[%s397_s25] sm:$0xff]  ;;  %551 = vmatpush.bf16.msra.mxu1 %v1153_v8  ;;  %s1610_s16 = smov 104   ;;  %vm631_vm3 = vcmask 1043456   ;;  %vm654_vm4 = vcmask 60416   ;;  %s1611_s5 = smov 8  }
  0x4c   : > { %v487_v6 = vpack.c.bf16 %v486_v4, %v486_v4  ;;  %v561_v7 = vpack.c.bf16 %v560_v5, %v560_v5  ;;  %v1152_v9 = vld [vmem:[#allocation14] sm:$0xff]  ;;  %v488_v10 = vld [vmem:[%s417_s21] sm:$0xff]  ;;  %s1612_s24 = smov 16   ;;  %s1613_s9 = smov 24   ;;  %vm729_vm5 = vcmask 126016   ;;  %vm795_vm6 = vcmask 191616  }
  0x4d   : > { %v489_v11 = vpack.c.bf16 %v488_v10, %v488_v10  ;;  %vm861_vm7 = vcmask 257216   ;;  %s1147_s10 = sshll.u32 %s1592_s30, 3  ;;  %s480_s12 = scalar_lea.vmem [#allocation17], %s1819_s4 }
  0x4e   : > { %517 = vmatpush.bf16.msra.mxu0 %v1150_v2  ;;  %589 = vmatpush.bf16.msra.mxu2 %v1154_v3  ;;  %s913_s20 = scalar_lea.hbm %s1929_s8, %s1147_s10  ;;  %s915_s14 = sshll.u32 %s480_s12, 4  ;;  %s916_s14 = int_to_ptr.vmem [resolvable:$true] %s915_s14 }
  0x4f   : > { %552 = vmatpush.bf16.msra.mxu1 %v1152_v9  ;;  %s917_s18 = sshll.u32 %s913_s20, 4  ;;  %s902_s6 = scalar_lea.sflag [#allocation7], %s1816_s3  ;;  %s918_s18 = int_to_ptr.hbm [resolvable:$true] %s917_s18 }
  0x50   : > { %s1520_s30 = sshra.s32 %s918_s18, 4  ;;  %s1526_s4 = scalar_lea.hbm %s1929_s8, 16  ;;  %s1521_s30 = int_to_ptr.hbm [resolvable:$true] %s1520_s30 }
  0x51   : > { %1110 = vmatmul.msk.bf16.vlgmr.msra.gmra.mxu0 %vm506_vm0, %v487_v6  ;;  %1128 = vmatmul.msk.bf16.vlgmr.msra.gmra.mxu2 %vm506_vm0, %v561_v7  ;;  %s1522_s25 = scalar_lea.hbm %s1521_s30, 8  ;;  %p1527_p10 = scmp.lt.s32.totalorder %s1521_s30, %s1929_s8 }
  0x52   : > { %1119 = vmatmul.msk.bf16.vlgmr.msra.gmra.mxu1 %vm506_vm0, %v489_v11  ;;  %p1523_p1 = scmp.ne.s32.totalorder %s1521_s30, %s1522_s25  ;;  %p1528_p11 = scmp.lt.s32.totalorder %s1526_s4, %s1522_s25 }
  0x54   : > { %p1524_p3 = pnand %p1523_p1, %p1747_p2  ;;  %p1529_p12 = por %p1528_p11, %p1527_p10 }
  0x56   : > { %p1525_p5 = pneg %p1524_p3 }
  0x58   : > { %p1530_p13 = pnand %p1529_p12, %p1525_p5 }
  0xce   : > { %v519_v12 = vpop.f32.mrf.mxu0 }
  0xcf   : > { %v523_v13 = vpack.c.bf16 %v519_v12, %v519_v12  ;;  %v554_v24 = vpop.f32.mrf.mxu1 }
  0xd0   : > { %v558_v25 = vpack.c.bf16 %v554_v24, %v554_v24 }
  0xd1   : > { %525 = vst.msk [vmem:[#allocation2] sm:$0xf] %vm524_vm1, %v523_v13 }
  0xd2   : > { %559 = vst.msk [vmem:[#allocation3] sm:$0xf] %vm524_vm1, %v558_v25 }
  0xd4   : > { %v591_v14 = vpop.f32.mrf.mxu2 }
  0xd5   : > { %v595_v15 = vpack.c.bf16 %v591_v14, %v591_v14 }
  0xd6   : > { %v521_v16 = vpop.f32.mrf.mxu0 }
  0xd7   : > { %v657_v17 = vunpack.c.l.b16 %v595_v15  ;;  %v556_v30 = vpop.f32.mrf.mxu1 }
  0xd8   : > { %v596_v18 = vld [vmem:[#allocation2] sm:$0xf] }
  0xd9   : > { %v658_v19 = vpack.c.b16 %v657_v17, %v657_v17  ;;  %v603_v20 = vsel %vm598_vm2, %v596_v18, 0  ;;  %v662_v21 = vunpack.c.l.b16 %v596_v18  ;;  %v597_v32 = vld [vmem:[#allocation3] sm:$0xf] }
  0xda   : > { %612 = vmatpush.bf16.xpose.msra.mxu3 %v603_v20  ;;  %v633_v35 = vsel %vm631_vm3, %v597_v32, 0  ;;  %v696_v36 = vunpack.c.l.b16 %v597_v32 }
  0xdb   : > { %v663_v22 = vpack.c.b16 %v662_v21, %v662_v21  ;;  %731 = vrot.lane.b32.xlu2 %v658_v19, %s1608_s11  ;;  %642 = vmatpush.bf16.msrb.mxu0 %v633_v35 }
  0xdc   : > { %v593_v23 = vpop.f32.mrf.mxu2  ;;  %v697_v38 = vpack.c.b16 %v696_v36, %v696_v36 }
  0xdd   : > { %733 = vrot.lane.b32.xlu1 %v663_v22, %s1608_s11  ;;  %664 = vrot.lane.b32.xlu0 %v663_v22, %s1609_s17 }
  0xe1   : > { %1129 = vmatmul.msk.bf16.vlgmr.msra.gmra.mxu3 %vm598_vm2, %v595_v15 }
  0xe3   : > { %797 = vrot.lane.b32.xlu2 %v658_v19, %s1610_s16 }
  0xe5   : > { %799 = vrot.lane.b32.xlu1 %v663_v22, %s1610_s16  ;;  %659 = vrot.lane.b32.xlu0 %v658_v19, %s1609_s17 }
  0xeb   : > { %698 = vrot.lane.b32.xlu2 %v697_v38, %s1609_s17 }
 0x135   : > { %v732_v31 = vpop.permute.xlu2 %731 }
 0x13d   : > { %v798_v41 = vpop.permute.xlu2 %797 }
 0x145   : > { %v699_v51 = vpop.permute.xlu2 %698 }
 0x146   : > { %v704_v52 = vsel %vm631_vm3, %v699_v51, 0 }
 0x147   : > { %713 = vmatpush.bf16.msrb.mxu2 %v704_v52 }
 0x14f   : > { %v734_v26 = vpop.permute.xlu1 %733  ;;  %v665_v27 = vpop.permute.xlu0 %664 }
 0x150   : > { %v670_v28 = vsel %vm598_vm2, %v665_v27, 0  ;;  %v739_v29 = vsel %vm598_vm2, %v734_v26, 0 }
 0x151   : > { %679 = vmatpush.bf16.xpose.msrb.mxu1 %v670_v28  ;;  %748 = vmatpush.bf16.xpose.msrb.mxu3 %v739_v29 }
 0x157   : > { %v800_v33 = vpop.permute.xlu1 %799  ;;  %v660_v34 = vpop.permute.xlu0 %659 }
 0x158   : > { %v805_v37 = vsel %vm598_vm2, %v800_v33, 0  ;;  %1131 = vmatmul.msk.bf16.vlgmr.msrb.gmra.mxu1 %vm598_vm2, %v660_v34  ;;  %1133 = vmatmul.msk.bf16.vlgmr.msrb.gmra.mxu3 %vm598_vm2, %v732_v31 }
 0x159   : > { %814 = vmatpush.bf16.xpose.msra.mxu1 %v805_v37 }
 0x164   : > { %v614_v39 = vpop.f32.mrf.mxu3 }
 0x165   : > { %v618_v40 = vsel %vm598_vm2, %v614_v39, -inf }
 0x166   : > { %619 = vmax.xlane.f32.xlu1 %v618_v40 }
 0x168   : > { %1135 = vmatmul.msk.bf16.vlgmr.msra.gmra.mxu1 %vm598_vm2, %v798_v41 }
 0x16c   : > { %v616_v42 = vpop.f32.mrf.mxu3 }
 0x17f   : > { %830 = vrot.lane.b32.xlu1 %v697_v38, %s1610_s16 }
 0x1d5   : > { %v681_v43 = vpop.f32.mrf.mxu1 }
 0x1d6   : > { %v685_v44 = vsel %vm598_vm2, %v681_v43, -inf }
 0x1d7   : > { %686 = vmax.xlane.f32.xlu0 %v685_v44 }
 0x1d9   : > { %v620_v45 = vpop.xlane.xlu1 %619 }
 0x1da   : > { %v621_v46 = vsub.f32 %v614_v39, %v620_v45 }
 0x1db   : > { %v750_v47 = vpop.f32.mrf.mxu3 }
 0x1dc   : > { %v622_v48 = vmul.f32 1.442695, %v621_v46  ;;  %v754_v50 = vsel %vm598_vm2, %v750_v47, -inf }
 0x1dd   : > { %v683_v49 = vpop.f32.mrf.mxu1 }
 0x1de   : > { %1280 = vpow2.f32 %v622_v48 }
 0x1df   : > { %755 = vmax.xlane.f32.xlu0 %v754_v50 }
 0x1e3   : > { %v752_v53 = vpop.f32.mrf.mxu3 }
 0x1e4   : > { %v1281_v54 = vpop.eup %1280 }
 0x1e5   : > { %v816_v55 = vpop.f32.mrf.mxu1  ;;  %v624_v56 = vsel %vm598_vm2, %v1281_v54, 0.0  ;;  %v627_v57 = vpack.c.bf16 %v1281_v54, %v1281_v54 }
 0x1e6   : > { %625 = vadd.xlane.f32.xlu1 %v624_v56  ;;  %v820_v58 = vsel %vm598_vm2, %v816_v55, -inf  ;;  %v1156_v56 = vld [vmem:[#allocation16] sm:$0xff] }
 0x1e7   : > { %821 = vmax.xlane.f32.xlu2 %v820_v58  ;;  %1130 = vmatmul.msk.bf16.vlgmr.msrb.gmra.mxu0 %vm598_vm2, %v627_v57 }
 0x1ed   : > { %v818_v59 = vpop.f32.mrf.mxu1 }
 0x1f1   : > { %v831_v60 = vpop.permute.xlu1 %830 }
 0x1f2   : > { %v836_v61 = vsel %vm631_vm3, %v831_v60, 0  ;;  %v1279_v60 = vld [vmem:[%s1928_s7] ss:$0 sm:$0xff] }
 0x1f3   : > { %845 = vmatpush.bf16.msra.mxu2 %v836_v61 }
 0x1ff   : > { %764 = vrot.lane.b32.xlu2 %v697_v38, %s1608_s11 }
 0x24a   : > { %v687_v62 = vpop.xlane.xlu0 %686 }
 0x24b   : > { %v688_v63 = vsub.f32 %v681_v43, %v687_v62 }
 0x24d   : > { %v689_v0 = vmul.f32 1.442695, %v688_v63 }
 0x24f   : > { %1282 = vpow2.f32 %v689_v0 }
 0x252   : > { %v756_v1 = vpop.xlane.xlu0 %755 }
 0x253   : > { %v757_v2 = vsub.f32 %v750_v47, %v756_v1 }
 0x255   : > { %v1283_v3 = vpop.eup %1282  ;;  %v758_v4 = vmul.f32 1.442695, %v757_v2 }
 0x256   : > { %v691_v5 = vsel %vm598_vm2, %v1283_v3, 0.0  ;;  %v694_v6 = vpack.c.bf16 %v1283_v3, %v1283_v3 }
 0x257   : > { %1284 = vpow2.f32 %v758_v4  ;;  %692 = vadd.xlane.f32.xlu0 %v691_v5 }
 0x258   : > { %1132 = vmatmul.msk.bf16.vlgmr.msrb.gmra.mxu2 %vm598_vm2, %v694_v6 }
 0x259   : > { %v626_v7 = vpop.xlane.xlu1 %625 }
 0x25a   : > { %1286 = vrcp.f32 %v626_v7  ;;  %v822_v8 = vpop.xlane.xlu2 %821 }
 0x25b   : > { %v823_v9 = vsub.f32 %v816_v55, %v822_v8  ;;  %v1157_v55 = vld [vmem:[#allocation16 + $0x8] sm:$0xff] }
 0x25c   : > { %893 = vmatpush.bf16.msra.mxu3 %v1157_v55 }
 0x25d   : > { %v1285_v10 = vpop.eup %1284  ;;  %v824_v11 = vmul.f32 1.442695, %v823_v9 }
 0x25e   : > { %v760_v12 = vsel %vm598_vm2, %v1285_v10, 0.0  ;;  %v763_v20 = vpack.c.bf16 %v1285_v10, %v1285_v10 }
 0x25f   : > { %1288 = vpow2.f32 %v824_v11  ;;  %761 = vadd.xlane.f32.xlu0 %v760_v12 }
 0x260   : > { %v1287_v13 = vpop.eup %1286  ;;  %894 = vmatpush.bf16.msra.mxu3 %v1156_v56 }
 0x261   : > { %v649_v14 = vmul.f32 %v1287_v13, %v626_v7 }
 0x262   : > { %v765_v15 = vpop.permute.xlu2 %764 }
 0x263   : > { %v650_v16 = vsub.f32 2.0, %v649_v14  ;;  %v770_v17 = vsel %vm631_vm3, %v765_v15, 0 }
 0x264   : > { %v644_v18 = vpop.f32.mrf.mxu0  ;;  %779 = vmatpush.bf16.msra.mxu0 %v770_v17 }
 0x265   : > { %v1289_v19 = vpop.eup %1288  ;;  %v651_v21 = vmul.f32 %v1287_v13, %v650_v16 }
 0x266   : > { %v829_v22 = vpack.c.bf16 %v1289_v19, %v1289_v19  ;;  %v826_v23 = vsel %vm598_vm2, %v1289_v19, 0.0 }
 0x267   : > { %v652_v24 = vmul.f32 %v651_v21, %v644_v18  ;;  %1134 = vmatmul.msk.bf16.vlgmr.msra.gmra.mxu0 %vm598_vm2, %v763_v20  ;;  %827 = vadd.xlane.f32.xlu0 %v826_v23 }
 0x268   : > { %1136 = vmatmul.msk.bf16.vlgmr.msra.gmra.mxu2 %vm598_vm2, %v829_v22 }
 0x269   : > { %v653_v25 = vpack.c.bf16 %v652_v24, %v652_v24 }
 0x26b   : > { %655 = vst.msk [vmem:[#allocation4] sm:$0xf] %vm654_vm4, %v653_v25 }
 0x26c   : > { %v646_v26 = vpop.f32.mrf.mxu0 }
 0x2ca   : > { %v693_v27 = vpop.xlane.xlu0 %692 }
 0x2cb   : > { %1290 = vrcp.f32 %v693_v27 }
 0x2d1   : > { %v1291_v28 = vpop.eup %1290 }
 0x2d2   : > { %v720_v29 = vmul.f32 %v1291_v28, %v693_v27  ;;  %v762_v30 = vpop.xlane.xlu0 %761 }
 0x2d3   : > { %1292 = vrcp.f32 %v762_v30 }
 0x2d4   : > { %v721_v31 = vsub.f32 2.0, %v720_v29 }
 0x2d6   : > { %v722_v34 = vmul.f32 %v1291_v28, %v721_v31 }
 0x2d9   : > { %v1293_v32 = vpop.eup %1292 }
 0x2da   : > { %v828_v33 = vpop.xlane.xlu0 %827  ;;  %v786_v35 = vmul.f32 %v1293_v32, %v762_v30 }
 0x2db   : > { %1294 = vrcp.f32 %v828_v33  ;;  %v715_v36 = vpop.f32.mrf.mxu2 }
 0x2dc   : > { %v723_v37 = vmul.f32 %v722_v34, %v715_v36  ;;  %v787_v39 = vsub.f32 2.0, %v786_v35 }
 0x2de   : > { %v724_v38 = vpack.c.bf16 %v723_v37, %v723_v37  ;;  %v788_v43 = vmul.f32 %v1293_v32, %v787_v39 }
 0x2e0   : > { %726 = vrot.lane.b32.xlu2 %v724_v38, %s1611_s5 }
 0x2e1   : > { %v1295_v40 = vpop.eup %1294 }
 0x2e2   : > { %v852_v41 = vmul.f32 %v1295_v40, %v828_v33 }
 0x2e3   : > { %v717_v42 = vpop.f32.mrf.mxu2 }
 0x2e4   : > { %v781_v44 = vpop.f32.mrf.mxu0  ;;  %v853_v46 = vsub.f32 2.0, %v852_v41 }
 0x2e5   : > { %v789_v45 = vmul.f32 %v788_v43, %v781_v44 }
 0x2e6   : > { %v854_v48 = vmul.f32 %v1295_v40, %v853_v46 }
 0x2e7   : > { %v790_v47 = vpack.c.bf16 %v789_v45, %v789_v45 }
 0x2e9   : > { %792 = vrot.lane.b32.xlu0 %v790_v47, %s1612_s24 }
 0x2eb   : > { %v847_v49 = vpop.f32.mrf.mxu2 }
 0x2ec   : > { %v855_v50 = vmul.f32 %v854_v48, %v847_v49  ;;  %v783_v51 = vpop.f32.mrf.mxu0 }
 0x2ee   : > { %v856_v52 = vpack.c.bf16 %v855_v50, %v855_v50 }
 0x2f0   : > { %858 = vrot.lane.b32.xlu2 %v856_v52, %s1613_s9 }
 0x2f3   : > { %v849_v53 = vpop.f32.mrf.mxu2 }
 0x33a   : > { %v727_v54 = vpop.permute.xlu2 %726 }
 0x33b   : > { %730 = vst.msk [vmem:[#allocation4] sm:$0xf] %vm729_vm5, %v727_v54 }
 0x34a   : > { %v859_v58 = vpop.permute.xlu2 %858 }
 0x35b   : > { %v793_v57 = vpop.permute.xlu0 %792 }
 0x35c   : > { %796 = vst.msk [vmem:[#allocation4] sm:$0xf] %vm795_vm6, %v793_v57 }
 0x35d   : > { %862 = vst.msk [vmem:[#allocation4] sm:$0xf] %vm861_vm7, %v859_v58 }
 0x364   : > { %v863_v59 = vld [vmem:[#allocation4] sm:$0xf] }
 0x365   : > { %1145 = vmatmul.msk.bf16.vlgmr.msra.gmra.mxu3 %vm506_vm0, %v863_v59 }
 0x3e8   : > { %v896_v61 = vpop.f32.mrf.mxu3 }
 0x3e9   : > { %v897_v62 = vadd.f32 %v1279_v60, %v896_v61 }
 0x3eb   : > { %900 = vst.msk [vmem:[%s480_s12] sm:$0xff] %vm506_vm0, %v897_v62 }
 0x3ec   : > { %1533 = shalt.err (!%p1530_p13)
}
 0x3ed   : > { %1180 = dma.vmem_to_hbm [thread:$0]  (%p1747_p2), %s916_s14, 128, %s918_s18, %s902_s6  }
 0x3f0   : > { %v898_v63 = vpop.f32.mrf.mxu3 }
 0x3f1 PF: > { %s1968_s11 = sld [smem:[#allocation24_spill]]  ;;  %s929_s17 = sand.u32 1, %s1580_s27  }
 0x3f2   : > { %p1206_p0 = pnand %p1086_p6, %p1754_p7  ;;  %s930_s16 = scalar_lea.sflag [#allocation7], %s929_s17 }
 0x3f4   : > { %p1207_p4 = pneg %p1206_p0 }
 0x3f6   : > { %1575 = dma.done.wait (%p1207_p4), %s930_s16, 128  }
 0x3f7   : > { %1577 = vsyncadd (%p1207_p4), %s930_s16, 4294967168  ;;  %s29_s10 = sadd.s32 1, %s1968_s11   ;;  %s1969_s19 = sld [smem:[#allocation26_spill]] }
 0x3f8   : > { %p26_p9 = scmp.ge.s32.totalorder %s29_s10, 4   ;;  %s1970_s30 = sld [smem:[#allocation23_spill]] }
 0x3f9   : > { %s1971_s9 = sld [smem:[#allocation25_spill]]  ;;  %s1972_s27 = smov %s1584_s28 }
 0x3fa   : > { %s1973_s28 = smov %s1588_s29  ;;  %28 = sbr.rel (!%p26_p9) target bundleno = 17 (0x11), region = 141 }
 0x3fd   : > { %s1974_s29 = smov %s1969_s19 }
 0x3ff   :  { %936 = vsyncpa [#allocation6], 1 }
 0x400   :  { %938 = vsyncpa [#allocation6 + $0x1], 1 }
 0x401   :  { %939 = vsyncpa [#allocation9], 1 }
 0x402   :  { %941 = vsyncpa [#allocation9 + $0x1], 1 }
 0x403   :  { %942 = vsyncpa [#allocation12], 1 }
 0x404   :  { %943 = vsyncpa [#allocation15], 1 }
 0x405   :  { %944 = vsyncpa [#allocation7], 1 }
 0x406   :  { %946 = vsyncpa [#allocation7 + $0x1], 1 }

// kernel: tpu_custom_call.1
= control target key start
LH: loop header
LB: loop body
LE: loop exit
PB: predicated region body
PF: predicated region fallthrough
CT: control target
= control target key end

     0   :  { %s1921_s0 = inlined_call_operand.hbm [shape: f32[2,8,32], index: 0, kind: input, shape index: {}]   ;;  %s1922_s1 = inlined_call_operand.hbm [shape: f32[2,8,32], index: 1, kind: input, shape index: {}]   ;;  %s1923_s2 = inlined_call_operand.hbm [shape: f32[2,8,32], index: 2, kind: input, shape index: {}]   ;;  %s1924_s3 = inlined_call_operand.hbm [shape: bf16[32,32], index: 3, kind: input, shape index: {}]   ;;  %s1925_s4 = inlined_call_operand.hbm [shape: bf16[32,32], index: 4, kind: input, shape index: {}]   ;;  %s1926_s5 = inlined_call_operand.hbm [shape: bf16[32,32], index: 5, kind: input, shape index: {}]   ;;  %s1927_s6 = inlined_call_operand.hbm [shape: bf16[32,32], index: 6, kind: input, shape index: {}]   ;;  %s1928_s7 = inlined_call_operand.vmem [shape: f32[1,32], index: 7, kind: input, shape index: {}]   ;;  %s1929_s8 = inlined_call_operand.hbm [shape: f32[2,8,32], index: 8, kind: output, shape index: {}]  }
   0x1   :  { %1940 = sst [smem:[#allocation28_spill]] %s1921_s0 }
   0x2   :  { %1941 = sst [smem:[#allocation29_spill]] %s1922_s1 }
   0x3   :  { %1942 = sst [smem:[#allocation30_spill]] %s1924_s3 }
   0x4   :  { %1943 = sst [smem:[#allocation31_spill]] %s1925_s4 }
   0x5   :  { %1944 = sst [smem:[#allocation32_spill]] %s1926_s5 }
   0x6   :  { %1945 = sst [smem:[#allocation33_spill]] %s1927_s6 }
   0x7   :  { %13 = vsyncpa [#allocation6], 0 }
   0x8   :  { %15 = vsyncpa [#allocation6 + $0x1], 0 }
   0x9   :  { %16 = vsyncpa [#allocation9], 0 }
   0xa   :  { %18 = vsyncpa [#allocation9 + $0x1], 0 }
   0xb   :  { %19 = vsyncpa [#allocation12], 0 }
   0xc   :  { %20 = vsyncpa [#allocation15], 0 }
   0xd   :  { %21 = vsyncpa [#allocation7], 0 }
   0xe   :  { %23 = vsyncpa [#allocation7 + $0x1], 0  ;;  %s1659_s27 = smov 0   ;;  %s1661_s28 = smov 0  }
   0xf   :  { %s1663_s29 = smov 0   ;;  %s1665_s30 = smov 0  }
  0x10   :  { %s1667_s9 = smov 0   ;;  %s1669_s10 = smov 0  }
  0x11 LB: > { %1946 = sst [smem:[#allocation23_spill]] %s1596_s9  ;;  %s1690_s11 = sadd.s32 4294967295, %s1600_s10   ;;  %s1600_s10 = sphi %s1669_s10, %s29_s10   ;;  %s1596_s9 = sphi %s1667_s9, %s1971_s9   ;;  %s1592_s30 = sphi %s1665_s30, %s1970_s30   ;;  %s1588_s29 = sphi %s1663_s29, %s1974_s29   ;;  %s1584_s28 = sphi %s1661_s28, %s1973_s28   ;;  %s1580_s27 = sphi %s1659_s27, %s1972_s27  }
  0x12   : > { %1947 = sst [smem:[#allocation24_spill]] %s1600_s10  ;;  %p1081_p0 = scmp.ge.s32.totalorder %s1600_s10, 1 }
  0x13   : > { %p64_p1 = scmp.eq.s32.totalorder %s1690_s11, 0  ;;  %p259_p2 = scmp.lt.s32.totalorder %s1600_s10, 3 }
  0x14   : > { %s1948_s3 = sld [smem:[#allocation30_spill]]  ;;  %s1602_s16 = smov [#allocation11]  }
  0x15   : > { %p1698_p3 = pnand %p1081_p0, %p259_p2  ;;  %s272_s17 = sshll.u32 %s1602_s16, 4  ;;  %s273_s17 = int_to_ptr.vmem [resolvable:$true] %s272_s17 }
  0x16   : > { %p1086_p6 = scmp.ge.s32.totalorder %s1600_s10, 2  ;;  %s1951_s5 = sld [smem:[#allocation32_spill]] }
  0x17   : > { %p1182_p4 = pneg %p1698_p3  ;;  %s1930_s22 = smov 64  }
  0x18   : > { %s1932_s23 = smov 4   ;;  %s1605_s24 = smov [#allocation14]  }
  0x19   : > { %p1706_p5 = pnand %p1182_p4, %p64_p1  ;;  %s300_s25 = sshll.u32 %s1605_s24, 4  ;;  %s301_s25 = int_to_ptr.vmem [resolvable:$true] %s300_s25 }
  0x1a   : > { %s270_s14 = sshll.u32 %s1948_s3, 4  ;;  %s1080_s26 = sadd.s32 4294967294, %s1600_s10   ;;  %s271_s14 = int_to_ptr.hbm [resolvable:$true] %s270_s14 }
  0x1b   : > { %1185 = dma.hbm_to_vmem [thread:$0]  (!%p1706_p5), %s271_s14, 256, %s273_s17, [#allocation12], %s1930_s22, %s1930_s22, %s1932_s23  }
  0x1c   : > { %s298_s21 = sshll.u32 %s1951_s5, 4  ;;  %s41_s12 = sadd.s32 1, %s1596_s9  ;;  %s299_s21 = int_to_ptr.hbm [resolvable:$true] %s298_s21 }
  0x1d   : > { %1191 = dma.hbm_to_vmem [thread:$0]  (!%p1706_p5), %s299_s21, 256, %s301_s25, [#allocation15], %s1930_s22, %s1930_s22, %s1932_s23  }
  0x1e   : > { %p43_p7 = scmp.ge.s32.totalorder %s41_s12, 2  ;;  %s50_s13 = sadd.s32 1, %s1588_s29 }
  0x1f   : > { %p57_p8 = scmp.ne.s32.totalorder %s1588_s29, %s1584_s28  ;;  %p58_p9 = scmp.eq.s32.totalorder %s1600_s10, 0 }
  0x20   : > { %s1976_s12 = smov (%p43_p7, %s41_s12), 0  ;;  %p63_p11 = scmp.ne.s32.totalorder %s1584_s28, %s1580_s27 }
  0x21   : > { %1952 = sst [smem:[#allocation25_spill]] %s1976_s12  ;;  %p1732_p10 = por %p58_p9, %p57_p8 }
  0x22   : > { %s45_s16 = ssub.s32 %s1596_s9, %s1976_s12  ;;  %p246_p12 = scmp.eq.s32.totalorder %s1690_s11, 1 }
  0x23   : > { %p48_p13 = scmp.eq.s32.totalorder %s45_s16, 0  ;;  %p1743_p0 = por %p64_p1, %p63_p11 }
  0x24   : > { %p1747_p2 = por %p246_p12, %p57_p8  ;;  %p252_p4 = scmp.eq.s32.totalorder %s1080_s26, 1 }
  0x25   : > { %s1752_s20 = scalar_select %p48_p13, %s1588_s29, %s50_s13  }
  0x26   : > { %p1754_p7 = por %p252_p4, %p63_p11  ;;  %p1213_p9 = scmp.lt.s32.totalorder %s1600_s10, 2 }
  0x27   : > { %1956 = sst [smem:[#allocation26_spill]] %s1752_s20  ;;  %s1936_s24 = sand.u32 1, %s1588_s29  }
  0x28   : > { %s1957_s21 = scalar_select %p1754_p7, 1, 0 }
  0x29   : > { %s1761_s25 = sshll.u32 %s1596_s9, 3  ;;  %s1765_s16 = sshll.u32 %s1936_s24, 3 }
  0x2a   : > { %1958 = sst [smem:[#allocation27_spill]] %s1957_s21  ;;  %p1769_p8 = pnand %p1213_p9, %p1732_p10 }
  0x2b   : > { %s351_s26 = sand.u32 1, %s1600_s10   ;;  %s1960_s1 = sld [smem:[#allocation29_spill]] }
  0x2c   : > { %s355_s5 = scalar_lea.vmem [#allocation8], %s1765_s16  ;;  %s1961_s4 = sld [smem:[#allocation31_spill]] }
  0x2d   : > { %s363_s12 = sshll.u32 %s355_s5, 4  ;;  %s352_s21 = scalar_lea.sflag [#allocation9], %s351_s26  ;;  %s364_s12 = int_to_ptr.vmem [resolvable:$true] %s363_s12 }
  0x2e   : > { %s1606_s10 = smov [#allocation13]   ;;  %s1962_s6 = sld [smem:[#allocation33_spill]] }
  0x2f   : > { %s286_s23 = sshll.u32 %s1606_s10, 4  ;;  %s1963_s5 = smov 4   ;;  %s287_s23 = int_to_ptr.vmem [resolvable:$true] %s286_s23 }
  0x30   : > { %s1964_s24 = smov 64   ;;  %s1607_s26 = smov [#allocation16]  }
  0x31   : > { %s359_s3 = scalar_lea.hbm %s1960_s1, %s1761_s25  ;;  %s1965_s0 = sld [smem:[#allocation28_spill]] }
  0x32   : > { %s361_s9 = sshll.u32 %s359_s3, 4  ;;  %s284_s20 = sshll.u32 %s1961_s4, 4  ;;  %s362_s9 = int_to_ptr.hbm [resolvable:$true] %s361_s9  ;;  %s285_s20 = int_to_ptr.hbm [resolvable:$true] %s284_s20 }
  0x33   : > { %1201 = dma.hbm_to_vmem [thread:$0]  (!%p1769_p8), %s362_s9, 128, %s364_s12, %s352_s21  }
  0x34   : > { %s312_s3 = sshll.u32 %s1962_s6, 4  ;;  %s314_s9 = sshll.u32 %s1607_s26, 4  ;;  %s313_s3 = int_to_ptr.hbm [resolvable:$true] %s312_s3  ;;  %s315_s9 = int_to_ptr.vmem [resolvable:$true] %s314_s9 }
  0x35   : > { %1188 = dma.hbm_to_vmem [thread:$0]  (!%p1706_p5), %s285_s20, 256, %s287_s23, [#allocation12], %s1964_s24, %s1964_s24, %s1963_s5  }
  0x36   : > { %1194 = dma.hbm_to_vmem [thread:$0]  (!%p1706_p5), %s313_s3, 256, %s315_s9, [#allocation15], %s1964_s24, %s1964_s24, %s1963_s5  }
  0x37   : > { %s340_s10 = scalar_lea.hbm %s1965_s0, %s1761_s25  ;;  %s335_s13 = scalar_lea.vmem [#allocation5], %s1765_s16 }
  0x38   : > { %s342_s1 = sshll.u32 %s340_s10, 4  ;;  %s344_s4 = sshll.u32 %s335_s13, 4  ;;  %s343_s1 = int_to_ptr.hbm [resolvable:$true] %s342_s1  ;;  %s345_s4 = int_to_ptr.vmem [resolvable:$true] %s344_s4 }
  0x39   : > { %s1966_s6 = sand.u32 1, %s1588_s29   ;;  %s378_s12 = scalar_lea.hbm %s1923_s2, %s1761_s25 }
  0x3a   : > { %s332_s20 = scalar_lea.sflag [#allocation6], %s1966_s6  ;;  %s380_s14 = sshll.u32 %s378_s12, 4  ;;  %s381_s14 = int_to_ptr.hbm [resolvable:$true] %s380_s14 }
  0x3b   : > { %1198 = dma.hbm_to_vmem [thread:$0]  (!%p1769_p8), %s343_s1, 128, %s345_s4, %s332_s20  }
  0x3c   : > { %s374_s0 = scalar_lea.vmem [#allocation10], %s1765_s16  ;;  %391 = sbr.rel (%p1698_p3) target bundleno = 1009 (0x3f1), region = 52 }
  0x3d   : > { %s382_s18 = sshll.u32 %s374_s0, 4  ;;  %s1816_s3 = sand.u32 (!%p1698_p3), 1, %s1584_s28   ;;  %s383_s18 = int_to_ptr.vmem [resolvable:$true] %s382_s18 }
  0x3e   : > { %1204 = dma.hbm_to_vmem [thread:$0]  (!%p1769_p8), %s381_s14, 128, %s383_s18, %s352_s21  }
  0x3f   : > { %s1819_s4 = sshll.u32 (!%p1698_p3), %s1816_s3, 3  ;;  %s394_s6 = scalar_lea.sflag (!%p1698_p3), [#allocation6], %s1816_s3 }
  0x40   : > { %s397_s25 = scalar_lea.vmem (!%p1698_p3), [#allocation5], %s1819_s4 }
  0x41   : > { %1559 = dma.done.wait (%p1743_p0), %s394_s6, 128  }
  0x42   : > { %1561 = vsyncadd (%p1743_p0), %s394_s6, 4294967168  ;;  %s403_s0 = sand.u32 1, %s1690_s11   ;;  %s407_s22 = scalar_lea.vmem [#allocation8], %s1819_s4 }
  0x43   : > { %s404_s15 = scalar_lea.sflag [#allocation9], %s403_s0 }
  0x44   : > { %1563 = dma.done.wait (%p1743_p0), %s404_s15, 256  }
  0x45   : > { %1565 = vsyncadd (%p1743_p0), %s404_s15, 4294967040  ;;  %s417_s21 = scalar_lea.vmem [#allocation10], %s1819_s4 }
  0x46   : > { %1567 = dma.done.wait (%p64_p1), [#allocation12], 512  }
  0x47   : > { %1569 = vsyncadd (%p64_p1), [#allocation12], 4294966784 }
  0x48   : > { %1571 = dma.done.wait (%p64_p1), [#allocation15], 512  }
  0x49   : > { %1573 = vsyncadd (%p64_p1), [#allocation15], 4294966784  ;;  %v1151_v0 = vld [vmem:[#allocation13 + $0x8] sm:$0xff]  ;;  %v1155_v1 = vld [vmem:[#allocation11 + $0x8] sm:$0xff]  ;;  %vm506_vm0 = vcmask 261120   ;;  %vm524_vm1 = vcmask 257024  }
  0x4a   : > { %v1150_v2 = vld [vmem:[#allocation13] sm:$0xff]  ;;  %v1154_v3 = vld [vmem:[#allocation11] sm:$0xff]  ;;  %516 = vmatpush.bf16.msra.mxu0 %v1151_v0  ;;  %588 = vmatpush.bf16.msra.mxu2 %v1155_v1  ;;  %v1153_v8 = vld [vmem:[#allocation14 + $0x8] sm:$0xff]  ;;  %vm598_vm2 = vcmask 64512   ;;  %s1608_s11 = smov 112   ;;  %s1609_s17 = smov 120  }
  0x4b   : > { %v486_v4 = vld [vmem:[%s407_s22] sm:$0xff]  ;;  %v560_v5 = vld [vmem:[%s397_s25] sm:$0xff]  ;;  %551 = vmatpush.bf16.msra.mxu1 %v1153_v8  ;;  %s1610_s16 = smov 104   ;;  %vm631_vm3 = vcmask 1043456   ;;  %vm654_vm4 = vcmask 60416   ;;  %s1611_s5 = smov 8  }
  0x4c   : > { %v487_v6 = vpack.c.bf16 %v486_v4, %v486_v4  ;;  %v561_v7 = vpack.c.bf16 %v560_v5, %v560_v5  ;;  %v1152_v9 = vld [vmem:[#allocation14] sm:$0xff]  ;;  %v488_v10 = vld [vmem:[%s417_s21] sm:$0xff]  ;;  %s1612_s24 = smov 16   ;;  %s1613_s9 = smov 24   ;;  %vm729_vm5 = vcmask 126016   ;;  %vm795_vm6 = vcmask 191616  }
  0x4d   : > { %v489_v11 = vpack.c.bf16 %v488_v10, %v488_v10  ;;  %vm861_vm7 = vcmask 257216   ;;  %s1147_s10 = sshll.u32 %s1592_s30, 3  ;;  %s480_s12 = scalar_lea.vmem [#allocation17], %s1819_s4 }
  0x4e   : > { %517 = vmatpush.bf16.msra.mxu0 %v1150_v2  ;;  %589 = vmatpush.bf16.msra.mxu2 %v1154_v3  ;;  %s913_s20 = scalar_lea.hbm %s1929_s8, %s1147_s10  ;;  %s915_s14 = sshll.u32 %s480_s12, 4  ;;  %s916_s14 = int_to_ptr.vmem [resolvable:$true] %s915_s14 }
  0x4f   : > { %552 = vmatpush.bf16.msra.mxu1 %v1152_v9  ;;  %s917_s18 = sshll.u32 %s913_s20, 4  ;;  %s902_s6 = scalar_lea.sflag [#allocation7], %s1816_s3  ;;  %s918_s18 = int_to_ptr.hbm [resolvable:$true] %s917_s18 }
  0x50   : > { %s1520_s30 = sshra.s32 %s918_s18, 4  ;;  %s1526_s4 = scalar_lea.hbm %s1929_s8, 16  ;;  %s1521_s30 = int_to_ptr.hbm [resolvable:$true] %s1520_s30 }
  0x51   : > { %1110 = vmatmul.msk.bf16.vlgmr.msra.gmra.mxu0 %vm506_vm0, %v487_v6  ;;  %1128 = vmatmul.msk.bf16.vlgmr.msra.gmra.mxu2 %vm506_vm0, %v561_v7  ;;  %s1522_s25 = scalar_lea.hbm %s1521_s30, 8  ;;  %p1527_p10 = scmp.lt.s32.totalorder %s1521_s30, %s1929_s8 }
  0x52   : > { %1119 = vmatmul.msk.bf16.vlgmr.msra.gmra.mxu1 %vm506_vm0, %v489_v11  ;;  %p1523_p1 = scmp.ne.s32.totalorder %s1521_s30, %s1522_s25  ;;  %p1528_p11 = scmp.lt.s32.totalorder %s1526_s4, %s1522_s25 }
  0x54   : > { %p1524_p3 = pnand %p1523_p1, %p1747_p2  ;;  %p1529_p12 = por %p1528_p11, %p1527_p10 }
  0x56   : > { %p1525_p5 = pneg %p1524_p3 }
  0x58   : > { %p1530_p13 = pnand %p1529_p12, %p1525_p5 }
  0xce   : > { %v519_v12 = vpop.f32.mrf.mxu0 }
  0xcf   : > { %v523_v13 = vpack.c.bf16 %v519_v12, %v519_v12  ;;  %v554_v24 = vpop.f32.mrf.mxu1 }
  0xd0   : > { %v558_v25 = vpack.c.bf16 %v554_v24, %v554_v24 }
  0xd1   : > { %525 = vst.msk [vmem:[#allocation2] sm:$0xf] %vm524_vm1, %v523_v13 }
  0xd2   : > { %559 = vst.msk [vmem:[#allocation3] sm:$0xf] %vm524_vm1, %v558_v25 }
  0xd4   : > { %v591_v14 = vpop.f32.mrf.mxu2 }
  0xd5   : > { %v595_v15 = vpack.c.bf16 %v591_v14, %v591_v14 }
  0xd6   : > { %v521_v16 = vpop.f32.mrf.mxu0 }
  0xd7   : > { %v657_v17 = vunpack.c.l.b16 %v595_v15  ;;  %v556_v30 = vpop.f32.mrf.mxu1 }
  0xd8   : > { %v596_v18 = vld [vmem:[#allocation2] sm:$0xf] }
  0xd9   : > { %v658_v19 = vpack.c.b16 %v657_v17, %v657_v17  ;;  %v603_v20 = vsel %vm598_vm2, %v596_v18, 0  ;;  %v662_v21 = vunpack.c.l.b16 %v596_v18  ;;  %v597_v32 = vld [vmem:[#allocation3] sm:$0xf] }
  0xda   : > { %612 = vmatpush.bf16.xpose.msra.mxu3 %v603_v20  ;;  %v633_v35 = vsel %vm631_vm3, %v597_v32, 0  ;;  %v696_v36 = vunpack.c.l.b16 %v597_v32 }
  0xdb   : > { %v663_v22 = vpack.c.b16 %v662_v21, %v662_v21  ;;  %731 = vrot.lane.b32.xlu2 %v658_v19, %s1608_s11  ;;  %642 = vmatpush.bf16.msrb.mxu0 %v633_v35 }
  0xdc   : > { %v593_v23 = vpop.f32.mrf.mxu2  ;;  %v697_v38 = vpack.c.b16 %v696_v36, %v696_v36 }
  0xdd   : > { %733 = vrot.lane.b32.xlu1 %v663_v22, %s1608_s11  ;;  %664 = vrot.lane.b32.xlu0 %v663_v22, %s1609_s17 }
  0xe1   : > { %1129 = vmatmul.msk.bf16.vlgmr.msra.gmra.mxu3 %vm598_vm2, %v595_v15 }
  0xe3   : > { %797 = vrot.lane.b32.xlu2 %v658_v19, %s1610_s16 }
  0xe5   : > { %799 = vrot.lane.b32.xlu1 %v663_v22, %s1610_s16  ;;  %659 = vrot.lane.b32.xlu0 %v658_v19, %s1609_s17 }
  0xeb   : > { %698 = vrot.lane.b32.xlu2 %v697_v38, %s1609_s17 }
 0x135   : > { %v732_v31 = vpop.permute.xlu2 %731 }
 0x13d   : > { %v798_v41 = vpop.permute.xlu2 %797 }
 0x145   : > { %v699_v51 = vpop.permute.xlu2 %698 }
 0x146   : > { %v704_v52 = vsel %vm631_vm3, %v699_v51, 0 }
 0x147   : > { %713 = vmatpush.bf16.msrb.mxu2 %v704_v52 }
 0x14f   : > { %v734_v26 = vpop.permute.xlu1 %733  ;;  %v665_v27 = vpop.permute.xlu0 %664 }
 0x150   : > { %v670_v28 = vsel %vm598_vm2, %v665_v27, 0  ;;  %v739_v29 = vsel %vm598_vm2, %v734_v26, 0 }
 0x151   : > { %679 = vmatpush.bf16.xpose.msrb.mxu1 %v670_v28  ;;  %748 = vmatpush.bf16.xpose.msrb.mxu3 %v739_v29 }
 0x157   : > { %v800_v33 = vpop.permute.xlu1 %799  ;;  %v660_v34 = vpop.permute.xlu0 %659 }
 0x158   : > { %v805_v37 = vsel %vm598_vm2, %v800_v33, 0  ;;  %1131 = vmatmul.msk.bf16.vlgmr.msrb.gmra.mxu1 %vm598_vm2, %v660_v34  ;;  %1133 = vmatmul.msk.bf16.vlgmr.msrb.gmra.mxu3 %vm598_vm2, %v732_v31 }
 0x159   : > { %814 = vmatpush.bf16.xpose.msra.mxu1 %v805_v37 }
 0x164   : > { %v614_v39 = vpop.f32.mrf.mxu3 }
 0x165   : > { %v618_v40 = vsel %vm598_vm2, %v614_v39, -inf }
 0x166   : > { %619 = vmax.xlane.f32.xlu1 %v618_v40 }
 0x168   : > { %1135 = vmatmul.msk.bf16.vlgmr.msra.gmra.mxu1 %vm598_vm2, %v798_v41 }
 0x16c   : > { %v616_v42 = vpop.f32.mrf.mxu3 }
 0x17f   : > { %830 = vrot.lane.b32.xlu1 %v697_v38, %s1610_s16 }
 0x1d5   : > { %v681_v43 = vpop.f32.mrf.mxu1 }
 0x1d6   : > { %v685_v44 = vsel %vm598_vm2, %v681_v43, -inf }
 0x1d7   : > { %686 = vmax.xlane.f32.xlu0 %v685_v44 }
 0x1d9   : > { %v620_v45 = vpop.xlane.xlu1 %619 }
 0x1da   : > { %v621_v46 = vsub.f32 %v614_v39, %v620_v45 }
 0x1db   : > { %v750_v47 = vpop.f32.mrf.mxu3 }
 0x1dc   : > { %v622_v48 = vmul.f32 1.442695, %v621_v46  ;;  %v754_v50 = vsel %vm598_vm2, %v750_v47, -inf }
 0x1dd   : > { %v683_v49 = vpop.f32.mrf.mxu1 }
 0x1de   : > { %1280 = vpow2.f32 %v622_v48 }
 0x1df   : > { %755 = vmax.xlane.f32.xlu0 %v754_v50 }
 0x1e3   : > { %v752_v53 = vpop.f32.mrf.mxu3 }
 0x1e4   : > { %v1281_v54 = vpop.eup %1280 }
 0x1e5   : > { %v816_v55 = vpop.f32.mrf.mxu1  ;;  %v624_v56 = vsel %vm598_vm2, %v1281_v54, 0.0  ;;  %v627_v57 = vpack.c.bf16 %v1281_v54, %v1281_v54 }
 0x1e6   : > { %625 = vadd.xlane.f32.xlu1 %v624_v56  ;;  %v820_v58 = vsel %vm598_vm2, %v816_v55, -inf  ;;  %v1156_v56 = vld [vmem:[#allocation16] sm:$0xff] }
 0x1e7   : > { %821 = vmax.xlane.f32.xlu2 %v820_v58  ;;  %1130 = vmatmul.msk.bf16.vlgmr.msrb.gmra.mxu0 %vm598_vm2, %v627_v57 }
 0x1ed   : > { %v818_v59 = vpop.f32.mrf.mxu1 }
 0x1f1   : > { %v831_v60 = vpop.permute.xlu1 %830 }
 0x1f2   : > { %v836_v61 = vsel %vm631_vm3, %v831_v60, 0  ;;  %v1279_v60 = vld [vmem:[%s1928_s7] ss:$0 sm:$0xff] }
 0x1f3   : > { %845 = vmatpush.bf16.msra.mxu2 %v836_v61 }
 0x1ff   : > { %764 = vrot.lane.b32.xlu2 %v697_v38, %s1608_s11 }
 0x24a   : > { %v687_v62 = vpop.xlane.xlu0 %686 }
 0x24b   : > { %v688_v63 = vsub.f32 %v681_v43, %v687_v62 }
 0x24d   : > { %v689_v0 = vmul.f32 1.442695, %v688_v63 }
 0x24f   : > { %1282 = vpow2.f32 %v689_v0 }
 0x252   : > { %v756_v1 = vpop.xlane.xlu0 %755 }
 0x253   : > { %v757_v2 = vsub.f32 %v750_v47, %v756_v1 }
 0x255   : > { %v1283_v3 = vpop.eup %1282  ;;  %v758_v4 = vmul.f32 1.442695, %v757_v2 }
 0x256   : > { %v691_v5 = vsel %vm598_vm2, %v1283_v3, 0.0  ;;  %v694_v6 = vpack.c.bf16 %v1283_v3, %v1283_v3 }
 0x257   : > { %1284 = vpow2.f32 %v758_v4  ;;  %692 = vadd.xlane.f32.xlu0 %v691_v5 }
 0x258   : > { %1132 = vmatmul.msk.bf16.vlgmr.msrb.gmra.mxu2 %vm598_vm2, %v694_v6 }
 0x259   : > { %v626_v7 = vpop.xlane.xlu1 %625 }
 0x25a   : > { %1286 = vrcp.f32 %v626_v7  ;;  %v822_v8 = vpop.xlane.xlu2 %821 }
 0x25b   : > { %v823_v9 = vsub.f32 %v816_v55, %v822_v8  ;;  %v1157_v55 = vld [vmem:[#allocation16 + $0x8] sm:$0xff] }
 0x25c   : > { %893 = vmatpush.bf16.msra.mxu3 %v1157_v55 }
 0x25d   : > { %v1285_v10 = vpop.eup %1284  ;;  %v824_v11 = vmul.f32 1.442695, %v823_v9 }
 0x25e   : > { %v760_v12 = vsel %vm598_vm2, %v1285_v10, 0.0  ;;  %v763_v20 = vpack.c.bf16 %v1285_v10, %v1285_v10 }
 0x25f   : > { %1288 = vpow2.f32 %v824_v11  ;;  %761 = vadd.xlane.f32.xlu0 %v760_v12 }
 0x260   : > { %v1287_v13 = vpop.eup %1286  ;;  %894 = vmatpush.bf16.msra.mxu3 %v1156_v56 }
 0x261   : > { %v649_v14 = vmul.f32 %v1287_v13, %v626_v7 }
 0x262   : > { %v765_v15 = vpop.permute.xlu2 %764 }
 0x263   : > { %v650_v16 = vsub.f32 2.0, %v649_v14  ;;  %v770_v17 = vsel %vm631_vm3, %v765_v15, 0 }
 0x264   : > { %v644_v18 = vpop.f32.mrf.mxu0  ;;  %779 = vmatpush.bf16.msra.mxu0 %v770_v17 }
 0x265   : > { %v1289_v19 = vpop.eup %1288  ;;  %v651_v21 = vmul.f32 %v1287_v13, %v650_v16 }
 0x266   : > { %v829_v22 = vpack.c.bf16 %v1289_v19, %v1289_v19  ;;  %v826_v23 = vsel %vm598_vm2, %v1289_v19, 0.0 }
 0x267   : > { %v652_v24 = vmul.f32 %v651_v21, %v644_v18  ;;  %1134 = vmatmul.msk.bf16.vlgmr.msra.gmra.mxu0 %vm598_vm2, %v763_v20  ;;  %827 = vadd.xlane.f32.xlu0 %v826_v23 }
 0x268   : > { %1136 = vmatmul.msk.bf16.vlgmr.msra.gmra.mxu2 %vm598_vm2, %v829_v22 }
 0x269   : > { %v653_v25 = vpack.c.bf16 %v652_v24, %v652_v24 }
 0x26b   : > { %655 = vst.msk [vmem:[#allocation4] sm:$0xf] %vm654_vm4, %v653_v25 }
 0x26c   : > { %v646_v26 = vpop.f32.mrf.mxu0 }
 0x2ca   : > { %v693_v27 = vpop.xlane.xlu0 %692 }
 0x2cb   : > { %1290 = vrcp.f32 %v693_v27 }
 0x2d1   : > { %v1291_v28 = vpop.eup %1290 }
 0x2d2   : > { %v720_v29 = vmul.f32 %v1291_v28, %v693_v27  ;;  %v762_v30 = vpop.xlane.xlu0 %761 }
 0x2d3   : > { %1292 = vrcp.f32 %v762_v30 }
 0x2d4   : > { %v721_v31 = vsub.f32 2.0, %v720_v29 }
 0x2d6   : > { %v722_v34 = vmul.f32 %v1291_v28, %v721_v31 }
 0x2d9   : > { %v1293_v32 = vpop.eup %1292 }
 0x2da   : > { %v828_v33 = vpop.xlane.xlu0 %827  ;;  %v786_v35 = vmul.f32 %v1293_v32, %v762_v30 }
 0x2db   : > { %1294 = vrcp.f32 %v828_v33  ;;  %v715_v36 = vpop.f32.mrf.mxu2 }
 0x2dc   : > { %v723_v37 = vmul.f32 %v722_v34, %v715_v36  ;;  %v787_v39 = vsub.f32 2.0, %v786_v35 }
 0x2de   : > { %v724_v38 = vpack.c.bf16 %v723_v37, %v723_v37  ;;  %v788_v43 = vmul.f32 %v1293_v32, %v787_v39 }
 0x2e0   : > { %726 = vrot.lane.b32.xlu2 %v724_v38, %s1611_s5 }
 0x2e1   : > { %v1295_v40 = vpop.eup %1294 }
 0x2e2   : > { %v852_v41 = vmul.f32 %v1295_v40, %v828_v33 }
 0x2e3   : > { %v717_v42 = vpop.f32.mrf.mxu2 }
 0x2e4   : > { %v781_v44 = vpop.f32.mrf.mxu0  ;;  %v853_v46 = vsub.f32 2.0, %v852_v41 }
 0x2e5   : > { %v789_v45 = vmul.f32 %v788_v43, %v781_v44 }
 0x2e6   : > { %v854_v48 = vmul.f32 %v1295_v40, %v853_v46 }
 0x2e7   : > { %v790_v47 = vpack.c.bf16 %v789_v45, %v789_v45 }
 0x2e9   : > { %792 = vrot.lane.b32.xlu0 %v790_v47, %s1612_s24 }
 0x2eb   : > { %v847_v49 = vpop.f32.mrf.mxu2 }
 0x2ec   : > { %v855_v50 = vmul.f32 %v854_v48, %v847_v49  ;;  %v783_v51 = vpop.f32.mrf.mxu0 }
 0x2ee   : > { %v856_v52 = vpack.c.bf16 %v855_v50, %v855_v50 }
 0x2f0   : > { %858 = vrot.lane.b32.xlu2 %v856_v52, %s1613_s9 }
 0x2f3   : > { %v849_v53 = vpop.f32.mrf.mxu2 }
 0x33a   : > { %v727_v54 = vpop.permute.xlu2 %726 }
 0x33b   : > { %730 = vst.msk [vmem:[#allocation4] sm:$0xf] %vm729_vm5, %v727_v54 }
 0x34a   : > { %v859_v58 = vpop.permute.xlu2 %858 }
 0x35b   : > { %v793_v57 = vpop.permute.xlu0 %792 }
 0x35c   : > { %796 = vst.msk [vmem:[#allocation4] sm:$0xf] %vm795_vm6, %v793_v57 }
 0x35d   : > { %862 = vst.msk [vmem:[#allocation4] sm:$0xf] %vm861_vm7, %v859_v58 }
 0x364   : > { %v863_v59 = vld [vmem:[#allocation4] sm:$0xf] }
 0x365   : > { %1145 = vmatmul.msk.bf16.vlgmr.msra.gmra.mxu3 %vm506_vm0, %v863_v59 }
 0x3e8   : > { %v896_v61 = vpop.f32.mrf.mxu3 }
 0x3e9   : > { %v897_v62 = vadd.f32 %v1279_v60, %v896_v61 }
 0x3eb   : > { %900 = vst.msk [vmem:[%s480_s12] sm:$0xff] %vm506_vm0, %v897_v62 }
 0x3ec   : > { %1533 = shalt.err (!%p1530_p13)
}
 0x3ed   : > { %1180 = dma.vmem_to_hbm [thread:$0]  (%p1747_p2), %s916_s14, 128, %s918_s18, %s902_s6  }
 0x3f0   : > { %v898_v63 = vpop.f32.mrf.mxu3 }
 0x3f1 PF: > { %s1968_s11 = sld [smem:[#allocation24_spill]]  ;;  %s929_s17 = sand.u32 1, %s1580_s27  }
 0x3f2   : > { %p1206_p0 = pnand %p1086_p6, %p1754_p7  ;;  %s930_s16 = scalar_lea.sflag [#allocation7], %s929_s17 }
 0x3f4   : > { %p1207_p4 = pneg %p1206_p0 }
 0x3f6   : > { %1575 = dma.done.wait (%p1207_p4), %s930_s16, 128  }
 0x3f7   : > { %1577 = vsyncadd (%p1207_p4), %s930_s16, 4294967168  ;;  %s29_s10 = sadd.s32 1, %s1968_s11   ;;  %s1969_s19 = sld [smem:[#allocation26_spill]] }
 0x3f8   : > { %p26_p9 = scmp.ge.s32.totalorder %s29_s10, 4   ;;  %s1970_s30 = sld [smem:[#allocation23_spill]] }
 0x3f9   : > { %s1971_s9 = sld [smem:[#allocation25_spill]]  ;;  %s1972_s27 = smov %s1584_s28 }
 0x3fa   : > { %s1973_s28 = smov %s1588_s29  ;;  %28 = sbr.rel (!%p26_p9) target bundleno = 17 (0x11), region = 141 }
 0x3fd   : > { %s1974_s29 = smov %s1969_s19 }
 0x3ff   :  { %936 = vsyncpa [#allocation6], 1 }
 0x400   :  { %938 = vsyncpa [#allocation6 + $0x1], 1 }
 0x401   :  { %939 = vsyncpa [#allocation9], 1 }
 0x402   :  { %941 = vsyncpa [#allocation9 + $0x1], 1 }
 0x403   :  { %942 = vsyncpa [#allocation12], 1 }
 0x404   :  { %943 = vsyncpa [#allocation15], 1 }
 0x405   :  { %944 = vsyncpa [#allocation7], 1 }
 0x406   :  { %946 = vsyncpa [#allocation7 + $0x1], 1 }

</bundles_post_ra>
